<compile_context>
chip_gen: v7x
topology: tpu7x:2x2x1
jax: 0.10.0
libtpu: 0.0.40
codegen_flags: <defaults>
</compile_context>

<pallas_src>
import jax
import jax.numpy as jnp
from jax.experimental import pallas as pl
from jax.experimental.pallas import tpu as pltpu

K = 5                      # Conv1d kernel size
C1_IN = 3                  # input channels
C_OUT = 16                 # channels of every conv layer
BPACK = 8                  # batch elements packed into lanes (8 * 16 = 128)
CPACK = BPACK * C_OUT      # packed lane width = 128


def _conv_lengths(L):
    """Mirror Conv1d(k=5, valid, stride 1) + MaxPool1d(2) lengths for 3 layers."""
    sizes = []
    for _ in range(3):
        L = L - (K - 1)
        sizes.append(L)      # conv output length
        L = L // 2
        sizes.append(L)      # pool output length (floor, ceil_mode=False)
    return sizes             # [L1, P1, L2, P2, L3, P3]


# ----------------------------- kernel ---------------------------------------


def _conv_bn_relu_pool(x, load_w, shift, z_ref):
    """One layer for BPACK lane-packed batch elements.

    x:        (L, lanes_in) f32 value (lanes_in = BPACK*Cin)
    load_w:   k -> (lanes_in, CPACK) block-diagonal BN-folded weight slice
    shift:    (1, CPACK) folded BN bias
    z_ref:    (L1_max, CPACK) VMEM scratch used for strided pooling
    returns   (L_out // 2, CPACK)
    """
    L = x.shape[0]
    L_out = L - (K - 1)
    P = L_out // 2

    # Conv1d(valid) as K shifted matmuls, accumulated in f32 (fully unrolled).
    acc = jnp.dot(x[0:L_out, :], load_w(0), preferred_element_type=jnp.float32)
    for k in range(1, K):
        acc = acc + jnp.dot(x[k:k + L_out, :], load_w(k),
                            preferred_element_type=jnp.float32)
    z = jnp.maximum(acc + shift, 0.0)          # folded BN bias + ReLU

    # MaxPool1d(k=2, s=2): stage in VMEM, read even/odd rows with a
    # sublane-strided load, elementwise max.  (No selector matmuls.)
    z_ref[0:L_out, :] = z
    even = z_ref[pl.ds(0, P, stride=2), :]
    odd = z_ref[pl.ds(1, P, stride=2), :]
    return jnp.maximum(even, odd)


def feature_extracter_kernel(x_ref, w1_ref, w23_ref, s_ref, o_ref, z_ref):
    # x_ref:   (TG, L, BPACK*3)      packed input block
    # w1_ref:  (K, BPACK*3, CPACK)   block-diag layer-1 weights (BN folded)
    # w23_ref: (2, K, CPACK, CPACK)  block-diag layer-2/3 weights (BN folded)
    # s_ref:   (3, 1, CPACK)         folded BN biases (lane-tiled)
    # o_ref:   (TG, P3, CPACK)       packed output block
    # z_ref:   (L1, CPACK)           VMEM scratch for strided pooling
    for g in range(x_ref.shape[0]):            # static, trace-time unrolled
        h = x_ref[g]                                              # (L, 24)
        h = _conv_bn_relu_pool(h, lambda k: w1_ref[k], s_ref[0], z_ref)
        h = _conv_bn_relu_pool(h, lambda k: w23_ref[0, k], s_ref[1], z_ref)
        h = _conv_bn_relu_pool(h, lambda k: w23_ref[1, k], s_ref[2], z_ref)
        o_ref[g] = h                                              # (P3, 128)


# ------------------------- host-side weight prep ----------------------------


def _fold_bn(w, b, gamma, beta, mean, var, eps=1e-5):
    """Fold eval-mode BatchNorm1d into conv weight/bias. w:(K,Cin,Cout)."""
    scale = gamma / jnp.sqrt(var + eps)                         # (Cout,)
    w_f = (w * scale[None, None, :]).astype(jnp.float32)
    shift = ((b - mean) * scale + beta).reshape(1, C_OUT).astype(jnp.float32)
    return w_f, shift


def _block_diag(w):
    """(K, Cin, Cout) -> lane-packed block-diagonal (K, BPACK*Cin, BPACK*Cout)."""
    K_, cin, cout = w.shape
    eye = jnp.eye(BPACK, dtype=w.dtype)
    wb = jnp.einsum("ab,kio->kaibo", eye, w)       # (K, BPACK, Cin, BPACK, Cout)
    return wb.reshape(K_, BPACK * cin, BPACK * cout)


def _tile_shift(s):
    """(1, C_OUT) -> (1, BPACK*C_OUT) matching block-diagonal column layout."""
    return jnp.tile(s, (1, BPACK))


# ------------------------------ wrapper --------------------------------------


def feature_extracter_forward(x_blc, params, *, groups_per_step=16):
    """x_blc: (batch, length, 3) — same input the PyTorch module receives."""
    x_blc = x_blc.astype(jnp.float32)
    B, L, cin = x_blc.shape
    assert cin == C1_IN
    L1, P1, L2, P2, L3, P3 = _conv_lengths(L)
    assert P3 >= 1, "input length too short for 3 conv+pool stages"

    # Fold BN + build lane-packed block-diagonal weights (host side, once).
    w1, s1 = _fold_bn(params["w1"], params["b1"], params["g1"], params["be1"],
                      params["m1"], params["v1"])
    w2, s2 = _fold_bn(params["w2"], params["b2"], params["g2"], params["be2"],
                      params["m2"], params["v2"])
    w3, s3 = _fold_bn(params["w3"], params["b3"], params["g3"], params["be3"],
                      params["m3"], params["v3"])
    w1p = _block_diag(w1)                                   # (K, 24, 128)
    w23p = jnp.stack([_block_diag(w2), _block_diag(w3)])    # (2, K, 128, 128)
    sp = jnp.stack([_tile_shift(s1), _tile_shift(s2), _tile_shift(s3)])  # (3,1,128)

    # Choose how many packed groups each grid step processes.
    G = pl.cdiv(B, BPACK)                       # number of lane-packed groups
    in_bytes = L * BPACK * C1_IN * 4
    tg_vmem = max(1, (8 << 20) // (2 * in_bytes))   # keep 2x input block <~8 MiB
    if G <= 1:
        TG = 1
    else:
        TG = max(1, min(groups_per_step, G // 2, tg_vmem))  # >=2 grid steps
    G_pad = TG * pl.cdiv(G, TG)
    B_pad = G_pad * BPACK

    # Pack batch into lanes: (B, L, 3) -> (G_pad, L, BPACK*3).
    xp = jnp.pad(x_blc, ((0, B_pad - B), (0, 0), (0, 0)))
    xp = xp.reshape(G_pad, BPACK, L, C1_IN).transpose(0, 2, 1, 3)
    xp = xp.reshape(G_pad, L, BPACK * C1_IN)

    out = pl.pallas_call(
        feature_extracter_kernel,
        out_shape=jax.ShapeDtypeStruct((G_pad, P3, CPACK), jnp.float32),
        grid_spec=pltpu.PrefetchScalarGridSpec(
            num_scalar_prefetch=0,
            grid=(G_pad // TG,),
            in_specs=[
                pl.BlockSpec((TG, L, BPACK * C1_IN), lambda i: (i, 0, 0)),
                pl.BlockSpec((K, BPACK * C1_IN, CPACK), lambda i: (0, 0, 0)),
                pl.BlockSpec((2, K, CPACK, CPACK), lambda i: (0, 0, 0, 0)),
                pl.BlockSpec((3, 1, CPACK), lambda i: (0, 0, 0)),
            ],
            out_specs=pl.BlockSpec((TG, P3, CPACK), lambda i: (i, 0, 0)),
            scratch_shapes=[pltpu.VMEM((L1, CPACK), jnp.float32)],
        ),
        compiler_params=pltpu.CompilerParams(
            dimension_semantics=("parallel",)),
    )(xp, w1p, w23p, sp)

    # Unpack lanes back to (B, P3, 16).
    out = out.reshape(G_pad, P3, BPACK, C_OUT).transpose(0, 2, 1, 3)
    return out.reshape(B_pad, P3, C_OUT)[:B]


# ------------------------------ test harness --------------------------------


def init_params(key):
    """Deterministic params: conv weights pre-transposed to (K, Cin, Cout)."""
    ks = jax.random.split(key, 6)

    def conv(k, cin):
        bound = 1.0 / jnp.sqrt(jnp.float32(cin * K))
        kw, kb = jax.random.split(k)
        w = jax.random.uniform(kw, (K, cin, C_OUT), jnp.float32, -bound, bound)
        b = jax.random.uniform(kb, (C_OUT,), jnp.float32, -bound, bound)
        return w, b

    def bn(k):
        k1, k2, k3, k4 = jax.random.split(k, 4)
        gamma = jax.random.uniform(k1, (C_OUT,), jnp.float32, 0.5, 1.5)
        beta = jax.random.uniform(k2, (C_OUT,), jnp.float32, -0.2, 0.2)
        mean = 0.1 * jax.random.normal(k3, (C_OUT,), jnp.float32)
        var = jax.random.uniform(k4, (C_OUT,), jnp.float32, 0.5, 1.5)
        return gamma, beta, mean, var

    p = {}
    p["w1"], p["b1"] = conv(ks[0], C1_IN)
    p["g1"], p["be1"], p["m1"], p["v1"] = bn(ks[1])
    p["w2"], p["b2"] = conv(ks[2], C_OUT)
    p["g2"], p["be2"], p["m2"], p["v2"] = bn(ks[3])
    p["w3"], p["b3"] = conv(ks[4], C_OUT)
    p["g3"], p["be3"], p["m3"], p["v3"] = bn(ks[5])
    return p


def reference_forward(x_blc, params):
    """Pure-JAX reference mirroring the PyTorch forward (eval-mode BatchNorm)."""
    def conv1d(x, w, b):                       # x:(B,L,Cin), w:(K,Cin,Cout)
        L_out = x.shape[1] - K + 1
        y = jnp.zeros((x.shape[0], L_out, w.shape[2]), jnp.float32) + b
        for k in range(K):
            y = y + jnp.einsum("blc,co->blo", x[:, k:k + L_out, :], w[k])
        return y

    def bn(y, gamma, beta, mean, var, eps=1e-5):
        return (y - mean) / jnp.sqrt(var + eps) * gamma + beta

    def pool(y):
        Bb, Ll, Cc = y.shape
        P = Ll // 2
        return y[:, :2 * P, :].reshape(Bb, P, 2, Cc).max(axis=2)

    x = x_blc.astype(jnp.float32)
    for i in ("1", "2", "3"):
        y = conv1d(x, params["w" + i], params["b" + i])
        y = bn(y, params["g" + i], params["be" + i],
               params["m" + i], params["v" + i])
        x = pool(jnp.maximum(y, 0.0))
    return x


if __name__ == "__main__":
    key = jax.random.PRNGKey(0)
    k_x, k_p = jax.random.split(key)

    batch, length = 2, 64
    x = jax.random.normal(k_x, (batch, length, C1_IN), jnp.float32)
    params = init_params(k_p)

    out = feature_extracter_forward(x, params)
    out = jax.block_until_ready(out)

    ref = reference_forward(x, params)
    _, _, _, _, _, P3 = _conv_lengths(length)
    assert out.shape == (batch, P3, C_OUT), out.shape
    assert jnp.allclose(out, ref, atol=1e-4, rtol=1e-4), (out, ref)

    print("KERNEL_OK")
</pallas_src>

<mosaic_0001>
module attributes {stable_mosaic.version = 11 : i64} {
  func.func @feature_extracter_kernel(%arg0: i32, %arg1: memref<1x64x24xf32, #tpu.memory_space<vmem>>, %arg2: memref<5x24x128xf32, #tpu.memory_space<vmem>>, %arg3: memref<2x5x128x128xf32, #tpu.memory_space<vmem>>, %arg4: memref<3x1x128xf32, #tpu.memory_space<vmem>>, %arg5: memref<1x4x128xf32, #tpu.memory_space<vmem>>, %arg6: memref<60x128xf32, #tpu.memory_space<vmem>>) attributes {dimension_semantics = [#tpu.dimension_semantics<parallel>], iteration_bounds = array<i64: 1>, scalar_prefetch = 0 : i64, scratch_operands = 1 : i64, tpu.core_type = #tpu.core_type<tc>, window_params = [{transform_indices = @transform_0, window_bounds = array<i64: 1, 64, 24>}, {pipeline_mode = #tpu.pipeline_mode<synchronous>, transform_indices = @transform_1, window_bounds = array<i64: 5, 24, 128>}, {pipeline_mode = #tpu.pipeline_mode<synchronous>, transform_indices = @transform_2, window_bounds = array<i64: 2, 5, 128, 128>}, {pipeline_mode = #tpu.pipeline_mode<synchronous>, transform_indices = @transform_3, window_bounds = array<i64: 3, 1, 128>}, {transform_indices = @transform_4, window_bounds = array<i64: 1, 4, 128>}]} {
    %c0 = arith.constant 0 : index
    %c0_0 = arith.constant 0 : index
    %c0_1 = arith.constant 0 : index
    %0 = vector.load %arg1[%c0, %c0_0, %c0_1] : memref<1x64x24xf32, #tpu.memory_space<vmem>>, vector<1x64x24xf32>
    %1 = vector.shape_cast %0 : vector<1x64x24xf32> to vector<64x24xf32>
    %c0_2 = arith.constant 0 : index
    %c0_3 = arith.constant 0 : index
    %c0_4 = arith.constant 0 : index
    %2 = vector.load %arg4[%c0_2, %c0_3, %c0_4] : memref<3x1x128xf32, #tpu.memory_space<vmem>>, vector<1x1x128xf32>
    %3 = vector.shape_cast %2 : vector<1x1x128xf32> to vector<1x128xf32>
    %4 = vector.extract_strided_slice %1 {offsets = [0, 0], sizes = [60, 24], strides = [1, 1]} : vector<64x24xf32> to vector<60x24xf32>
    %c0_5 = arith.constant 0 : index
    %c0_6 = arith.constant 0 : index
    %c0_7 = arith.constant 0 : index
    %5 = vector.load %arg2[%c0_5, %c0_6, %c0_7] : memref<5x24x128xf32, #tpu.memory_space<vmem>>, vector<1x24x128xf32>
    %6 = vector.shape_cast %5 : vector<1x24x128xf32> to vector<24x128xf32>
    %cst = arith.constant dense<0.000000e+00> : vector<60x128xf32>
    %7 = tpu.matmul %4, %6, %cst {dimension_numbers = #tpu.dot_dimension_numbers<[1], [0], [0], [1], [0, 0, 1, 1], [], []>} : vector<60x24xf32>, vector<24x128xf32>, vector<60x128xf32> -> vector<60x128xf32>
    %8 = vector.extract_strided_slice %1 {offsets = [1, 0], sizes = [60, 24], strides = [1, 1]} : vector<64x24xf32> to vector<60x24xf32>
    %c1 = arith.constant 1 : index
    %c0_8 = arith.constant 0 : index
    %c0_9 = arith.constant 0 : index
    %9 = vector.load %arg2[%c1, %c0_8, %c0_9] : memref<5x24x128xf32, #tpu.memory_space<vmem>>, vector<1x24x128xf32>
    %10 = vector.shape_cast %9 : vector<1x24x128xf32> to vector<24x128xf32>
    %cst_10 = arith.constant dense<0.000000e+00> : vector<60x128xf32>
    %11 = tpu.matmul %8, %10, %cst_10 {dimension_numbers = #tpu.dot_dimension_numbers<[1], [0], [0], [1], [0, 0, 1, 1], [], []>} : vector<60x24xf32>, vector<24x128xf32>, vector<60x128xf32> -> vector<60x128xf32>
    %12 = arith.addf %7, %11 : vector<60x128xf32>
    %13 = vector.extract_strided_slice %1 {offsets = [2, 0], sizes = [60, 24], strides = [1, 1]} : vector<64x24xf32> to vector<60x24xf32>
    %c2 = arith.constant 2 : index
    %c0_11 = arith.constant 0 : index
    %c0_12 = arith.constant 0 : index
    %14 = vector.load %arg2[%c2, %c0_11, %c0_12] : memref<5x24x128xf32, #tpu.memory_space<vmem>>, vector<1x24x128xf32>
    %15 = vector.shape_cast %14 : vector<1x24x128xf32> to vector<24x128xf32>
    %cst_13 = arith.constant dense<0.000000e+00> : vector<60x128xf32>
    %16 = tpu.matmul %13, %15, %cst_13 {dimension_numbers = #tpu.dot_dimension_numbers<[1], [0], [0], [1], [0, 0, 1, 1], [], []>} : vector<60x24xf32>, vector<24x128xf32>, vector<60x128xf32> -> vector<60x128xf32>
    %17 = arith.addf %12, %16 : vector<60x128xf32>
    %18 = vector.extract_strided_slice %1 {offsets = [3, 0], sizes = [60, 24], strides = [1, 1]} : vector<64x24xf32> to vector<60x24xf32>
    %c3 = arith.constant 3 : index
    %c0_14 = arith.constant 0 : index
    %c0_15 = arith.constant 0 : index
    %19 = vector.load %arg2[%c3, %c0_14, %c0_15] : memref<5x24x128xf32, #tpu.memory_space<vmem>>, vector<1x24x128xf32>
    %20 = vector.shape_cast %19 : vector<1x24x128xf32> to vector<24x128xf32>
    %cst_16 = arith.constant dense<0.000000e+00> : vector<60x128xf32>
    %21 = tpu.matmul %18, %20, %cst_16 {dimension_numbers = #tpu.dot_dimension_numbers<[1], [0], [0], [1], [0, 0, 1, 1], [], []>} : vector<60x24xf32>, vector<24x128xf32>, vector<60x128xf32> -> vector<60x128xf32>
    %22 = arith.addf %17, %21 : vector<60x128xf32>
    %23 = vector.extract_strided_slice %1 {offsets = [4, 0], sizes = [60, 24], strides = [1, 1]} : vector<64x24xf32> to vector<60x24xf32>
    %c4 = arith.constant 4 : index
    %c0_17 = arith.constant 0 : index
    %c0_18 = arith.constant 0 : index
    %24 = vector.load %arg2[%c4, %c0_17, %c0_18] : memref<5x24x128xf32, #tpu.memory_space<vmem>>, vector<1x24x128xf32>
    %25 = vector.shape_cast %24 : vector<1x24x128xf32> to vector<24x128xf32>
    %cst_19 = arith.constant dense<0.000000e+00> : vector<60x128xf32>
    %26 = tpu.matmul %23, %25, %cst_19 {dimension_numbers = #tpu.dot_dimension_numbers<[1], [0], [0], [1], [0, 0, 1, 1], [], []>} : vector<60x24xf32>, vector<24x128xf32>, vector<60x128xf32> -> vector<60x128xf32>
    %27 = arith.addf %22, %26 : vector<60x128xf32>
    %28 = vector.broadcast %3 : vector<1x128xf32> to vector<60x128xf32>
    %29 = arith.addf %27, %28 : vector<60x128xf32>
    %cst_20 = arith.constant 0.000000e+00 : f32
    %30 = vector.broadcast %cst_20 : f32 to vector<60x128xf32>
    %31 = arith.maximumf %29, %30 : vector<60x128xf32>
    %c0_21 = arith.constant 0 : index
    %c0_22 = arith.constant 0 : index
    %32 = vector.load %arg6[%c0_21, %c0_22] : memref<60x128xf32, #tpu.memory_space<vmem>>, vector<60x128xf32>
    tpu.vector_store %arg6[%c0_21, %c0_22], %31 {strides = array<i32>} : memref<60x128xf32, #tpu.memory_space<vmem>>, vector<60x128xf32>,
    %c0_23 = arith.constant 0 : index
    %c0_24 = arith.constant 0 : index
    %33 = tpu.strided_load %arg6[%c0_23, %c0_24] {strides = array<i32: 2, 1>} : memref<60x128xf32, #tpu.memory_space<vmem>>, vector<30x128xf32>
    %c1_25 = arith.constant 1 : index
    %c0_26 = arith.constant 0 : index
    %34 = tpu.strided_load %arg6[%c1_25, %c0_26] {strides = array<i32: 2, 1>} : memref<60x128xf32, #tpu.memory_space<vmem>>, vector<30x128xf32>
    %35 = arith.maximumf %33, %34 : vector<30x128xf32>
    %c1_27 = arith.constant 1 : index
    %c0_28 = arith.constant 0 : index
    %c0_29 = arith.constant 0 : index
    %36 = vector.load %arg4[%c1_27, %c0_28, %c0_29] : memref<3x1x128xf32, #tpu.memory_space<vmem>>, vector<1x1x128xf32>
    %37 = vector.shape_cast %36 : vector<1x1x128xf32> to vector<1x128xf32>
    %38 = vector.extract_strided_slice %35 {offsets = [0, 0], sizes = [26, 128], strides = [1, 1]} : vector<30x128xf32> to vector<26x128xf32>
    %c0_30 = arith.constant 0 : index
    %c0_31 = arith.constant 0 : index
    %c0_32 = arith.constant 0 : index
    %c0_33 = arith.constant 0 : index
    %39 = vector.load %arg3[%c0_30, %c0_31, %c0_32, %c0_33] : memref<2x5x128x128xf32, #tpu.memory_space<vmem>>, vector<1x1x128x128xf32>
    %40 = vector.shape_cast %39 : vector<1x1x128x128xf32> to vector<128x128xf32>
    %cst_34 = arith.constant dense<0.000000e+00> : vector<26x128xf32>
    %41 = tpu.matmul %38, %40, %cst_34 {dimension_numbers = #tpu.dot_dimension_numbers<[1], [0], [0], [1], [0, 0, 1, 1], [], []>} : vector<26x128xf32>, vector<128x128xf32>, vector<26x128xf32> -> vector<26x128xf32>
    %42 = vector.extract_strided_slice %35 {offsets = [1, 0], sizes = [26, 128], strides = [1, 1]} : vector<30x128xf32> to vector<26x128xf32>
    %c0_35 = arith.constant 0 : index
    %c1_36 = arith.constant 1 : index
    %c0_37 = arith.constant 0 : index
    %c0_38 = arith.constant 0 : index
    %43 = vector.load %arg3[%c0_35, %c1_36, %c0_37, %c0_38] : memref<2x5x128x128xf32, #tpu.memory_space<vmem>>, vector<1x1x128x128xf32>
    %44 = vector.shape_cast %43 : vector<1x1x128x128xf32> to vector<128x128xf32>
    %cst_39 = arith.constant dense<0.000000e+00> : vector<26x128xf32>
    %45 = tpu.matmul %42, %44, %cst_39 {dimension_numbers = #tpu.dot_dimension_numbers<[1], [0], [0], [1], [0, 0, 1, 1], [], []>} : vector<26x128xf32>, vector<128x128xf32>, vector<26x128xf32> -> vector<26x128xf32>
    %46 = arith.addf %41, %45 : vector<26x128xf32>
    %47 = vector.extract_strided_slice %35 {offsets = [2, 0], sizes = [26, 128], strides = [1, 1]} : vector<30x128xf32> to vector<26x128xf32>
    %c0_40 = arith.constant 0 : index
    %c2_41 = arith.constant 2 : index
    %c0_42 = arith.constant 0 : index
    %c0_43 = arith.constant 0 : index
    %48 = vector.load %arg3[%c0_40, %c2_41, %c0_42, %c0_43] : memref<2x5x128x128xf32, #tpu.memory_space<vmem>>, vector<1x1x128x128xf32>
    %49 = vector.shape_cast %48 : vector<1x1x128x128xf32> to vector<128x128xf32>
    %cst_44 = arith.constant dense<0.000000e+00> : vector<26x128xf32>
    %50 = tpu.matmul %47, %49, %cst_44 {dimension_numbers = #tpu.dot_dimension_numbers<[1], [0], [0], [1], [0, 0, 1, 1], [], []>} : vector<26x128xf32>, vector<128x128xf32>, vector<26x128xf32> -> vector<26x128xf32>
    %51 = arith.addf %46, %50 : vector<26x128xf32>
    %52 = vector.extract_strided_slice %35 {offsets = [3, 0], sizes = [26, 128], strides = [1, 1]} : vector<30x128xf32> to vector<26x128xf32>
    %c0_45 = arith.constant 0 : index
    %c3_46 = arith.constant 3 : index
    %c0_47 = arith.constant 0 : index
    %c0_48 = arith.constant 0 : index
    %53 = vector.load %arg3[%c0_45, %c3_46, %c0_47, %c0_48] : memref<2x5x128x128xf32, #tpu.memory_space<vmem>>, vector<1x1x128x128xf32>
    %54 = vector.shape_cast %53 : vector<1x1x128x128xf32> to vector<128x128xf32>
    %cst_49 = arith.constant dense<0.000000e+00> : vector<26x128xf32>
    %55 = tpu.matmul %52, %54, %cst_49 {dimension_numbers = #tpu.dot_dimension_numbers<[1], [0], [0], [1], [0, 0, 1, 1], [], []>} : vector<26x128xf32>, vector<128x128xf32>, vector<26x128xf32> -> vector<26x128xf32>
    %56 = arith.addf %51, %55 : vector<26x128xf32>
    %57 = vector.extract_strided_slice %35 {offsets = [4, 0], sizes = [26, 128], strides = [1, 1]} : vector<30x128xf32> to vector<26x128xf32>
    %c0_50 = arith.constant 0 : index
    %c4_51 = arith.constant 4 : index
    %c0_52 = arith.constant 0 : index
    %c0_53 = arith.constant 0 : index
    %58 = vector.load %arg3[%c0_50, %c4_51, %c0_52, %c0_53] : memref<2x5x128x128xf32, #tpu.memory_space<vmem>>, vector<1x1x128x128xf32>
    %59 = vector.shape_cast %58 : vector<1x1x128x128xf32> to vector<128x128xf32>
    %cst_54 = arith.constant dense<0.000000e+00> : vector<26x128xf32>
    %60 = tpu.matmul %57, %59, %cst_54 {dimension_numbers = #tpu.dot_dimension_numbers<[1], [0], [0], [1], [0, 0, 1, 1], [], []>} : vector<26x128xf32>, vector<128x128xf32>, vector<26x128xf32> -> vector<26x128xf32>
    %61 = arith.addf %56, %60 : vector<26x128xf32>
    %62 = vector.broadcast %37 : vector<1x128xf32> to vector<26x128xf32>
    %63 = arith.addf %61, %62 : vector<26x128xf32>
    %cst_55 = arith.constant 0.000000e+00 : f32
    %64 = vector.broadcast %cst_55 : f32 to vector<26x128xf32>
    %65 = arith.maximumf %63, %64 : vector<26x128xf32>
    %c0_56 = arith.constant 0 : index
    %c0_57 = arith.constant 0 : index
    %66 = vector.load %arg6[%c0_56, %c0_57] : memref<60x128xf32, #tpu.memory_space<vmem>>, vector<26x128xf32>
    tpu.vector_store %arg6[%c0_56, %c0_57], %65 {strides = array<i32>} : memref<60x128xf32, #tpu.memory_space<vmem>>, vector<26x128xf32>,
    %c0_58 = arith.constant 0 : index
    %c0_59 = arith.constant 0 : index
    %67 = tpu.strided_load %arg6[%c0_58, %c0_59] {strides = array<i32: 2, 1>} : memref<60x128xf32, #tpu.memory_space<vmem>>, vector<13x128xf32>
    %c1_60 = arith.constant 1 : index
    %c0_61 = arith.constant 0 : index
    %68 = tpu.strided_load %arg6[%c1_60, %c0_61] {strides = array<i32: 2, 1>} : memref<60x128xf32, #tpu.memory_space<vmem>>, vector<13x128xf32>
    %69 = arith.maximumf %67, %68 : vector<13x128xf32>
    %c2_62 = arith.constant 2 : index
    %c0_63 = arith.constant 0 : index
    %c0_64 = arith.constant 0 : index
    %70 = vector.load %arg4[%c2_62, %c0_63, %c0_64] : memref<3x1x128xf32, #tpu.memory_space<vmem>>, vector<1x1x128xf32>
    %71 = vector.shape_cast %70 : vector<1x1x128xf32> to vector<1x128xf32>
    %72 = vector.extract_strided_slice %69 {offsets = [0, 0], sizes = [9, 128], strides = [1, 1]} : vector<13x128xf32> to vector<9x128xf32>
    %c1_65 = arith.constant 1 : index
    %c0_66 = arith.constant 0 : index
    %c0_67 = arith.constant 0 : index
    %c0_68 = arith.constant 0 : index
    %73 = vector.load %arg3[%c1_65, %c0_66, %c0_67, %c0_68] : memref<2x5x128x128xf32, #tpu.memory_space<vmem>>, vector<1x1x128x128xf32>
    %74 = vector.shape_cast %73 : vector<1x1x128x128xf32> to vector<128x128xf32>
    %cst_69 = arith.constant dense<0.000000e+00> : vector<9x128xf32>
    %75 = tpu.matmul %72, %74, %cst_69 {dimension_numbers = #tpu.dot_dimension_numbers<[1], [0], [0], [1], [0, 0, 1, 1], [], []>} : vector<9x128xf32>, vector<128x128xf32>, vector<9x128xf32> -> vector<9x128xf32>
    %76 = vector.extract_strided_slice %69 {offsets = [1, 0], sizes = [9, 128], strides = [1, 1]} : vector<13x128xf32> to vector<9x128xf32>
    %c1_70 = arith.constant 1 : index
    %c1_71 = arith.constant 1 : index
    %c0_72 = arith.constant 0 : index
    %c0_73 = arith.constant 0 : index
    %77 = vector.load %arg3[%c1_70, %c1_71, %c0_72, %c0_73] : memref<2x5x128x128xf32, #tpu.memory_space<vmem>>, vector<1x1x128x128xf32>
    %78 = vector.shape_cast %77 : vector<1x1x128x128xf32> to vector<128x128xf32>
    %cst_74 = arith.constant dense<0.000000e+00> : vector<9x128xf32>
    %79 = tpu.matmul %76, %78, %cst_74 {dimension_numbers = #tpu.dot_dimension_numbers<[1], [0], [0], [1], [0, 0, 1, 1], [], []>} : vector<9x128xf32>, vector<128x128xf32>, vector<9x128xf32> -> vector<9x128xf32>
    %80 = arith.addf %75, %79 : vector<9x128xf32>
    %81 = vector.extract_strided_slice %69 {offsets = [2, 0], sizes = [9, 128], strides = [1, 1]} : vector<13x128xf32> to vector<9x128xf32>
    %c1_75 = arith.constant 1 : index
    %c2_76 = arith.constant 2 : index
    %c0_77 = arith.constant 0 : index
    %c0_78 = arith.constant 0 : index
    %82 = vector.load %arg3[%c1_75, %c2_76, %c0_77, %c0_78] : memref<2x5x128x128xf32, #tpu.memory_space<vmem>>, vector<1x1x128x128xf32>
    %83 = vector.shape_cast %82 : vector<1x1x128x128xf32> to vector<128x128xf32>
    %cst_79 = arith.constant dense<0.000000e+00> : vector<9x128xf32>
    %84 = tpu.matmul %81, %83, %cst_79 {dimension_numbers = #tpu.dot_dimension_numbers<[1], [0], [0], [1], [0, 0, 1, 1], [], []>} : vector<9x128xf32>, vector<128x128xf32>, vector<9x128xf32> -> vector<9x128xf32>
    %85 = arith.addf %80, %84 : vector<9x128xf32>
    %86 = vector.extract_strided_slice %69 {offsets = [3, 0], sizes = [9, 128], strides = [1, 1]} : vector<13x128xf32> to vector<9x128xf32>
    %c1_80 = arith.constant 1 : index
    %c3_81 = arith.constant 3 : index
    %c0_82 = arith.constant 0 : index
    %c0_83 = arith.constant 0 : index
    %87 = vector.load %arg3[%c1_80, %c3_81, %c0_82, %c0_83] : memref<2x5x128x128xf32, #tpu.memory_space<vmem>>, vector<1x1x128x128xf32>
    %88 = vector.shape_cast %87 : vector<1x1x128x128xf32> to vector<128x128xf32>
    %cst_84 = arith.constant dense<0.000000e+00> : vector<9x128xf32>
    %89 = tpu.matmul %86, %88, %cst_84 {dimension_numbers = #tpu.dot_dimension_numbers<[1], [0], [0], [1], [0, 0, 1, 1], [], []>} : vector<9x128xf32>, vector<128x128xf32>, vector<9x128xf32> -> vector<9x128xf32>
    %90 = arith.addf %85, %89 : vector<9x128xf32>
    %91 = vector.extract_strided_slice %69 {offsets = [4, 0], sizes = [9, 128], strides = [1, 1]} : vector<13x128xf32> to vector<9x128xf32>
    %c1_85 = arith.constant 1 : index
    %c4_86 = arith.constant 4 : index
    %c0_87 = arith.constant 0 : index
    %c0_88 = arith.constant 0 : index
    %92 = vector.load %arg3[%c1_85, %c4_86, %c0_87, %c0_88] : memref<2x5x128x128xf32, #tpu.memory_space<vmem>>, vector<1x1x128x128xf32>
    %93 = vector.shape_cast %92 : vector<1x1x128x128xf32> to vector<128x128xf32>
    %cst_89 = arith.constant dense<0.000000e+00> : vector<9x128xf32>
    %94 = tpu.matmul %91, %93, %cst_89 {dimension_numbers = #tpu.dot_dimension_numbers<[1], [0], [0], [1], [0, 0, 1, 1], [], []>} : vector<9x128xf32>, vector<128x128xf32>, vector<9x128xf32> -> vector<9x128xf32>
    %95 = arith.addf %90, %94 : vector<9x128xf32>
    %96 = vector.broadcast %71 : vector<1x128xf32> to vector<9x128xf32>
    %97 = arith.addf %95, %96 : vector<9x128xf32>
    %cst_90 = arith.constant 0.000000e+00 : f32
    %98 = vector.broadcast %cst_90 : f32 to vector<9x128xf32>
    %99 = arith.maximumf %97, %98 : vector<9x128xf32>
    %c0_91 = arith.constant 0 : index
    %c0_92 = arith.constant 0 : index
    %100 = vector.load %arg6[%c0_91, %c0_92] : memref<60x128xf32, #tpu.memory_space<vmem>>, vector<9x128xf32>
    tpu.vector_store %arg6[%c0_91, %c0_92], %99 {strides = array<i32>} : memref<60x128xf32, #tpu.memory_space<vmem>>, vector<9x128xf32>,
    %c0_93 = arith.constant 0 : index
    %c0_94 = arith.constant 0 : index
    %101 = tpu.strided_load %arg6[%c0_93, %c0_94] {strides = array<i32: 2, 1>} : memref<60x128xf32, #tpu.memory_space<vmem>>, vector<4x128xf32>
    %c1_95 = arith.constant 1 : index
    %c0_96 = arith.constant 0 : index
    %102 = tpu.strided_load %arg6[%c1_95, %c0_96] {strides = array<i32: 2, 1>} : memref<60x128xf32, #tpu.memory_space<vmem>>, vector<4x128xf32>
    %103 = arith.maximumf %101, %102 : vector<4x128xf32>
    %c0_97 = arith.constant 0 : index
    %c0_98 = arith.constant 0 : index
    %c0_99 = arith.constant 0 : index
    %104 = vector.load %arg5[%c0_97, %c0_98, %c0_99] : memref<1x4x128xf32, #tpu.memory_space<vmem>>, vector<1x4x128xf32>
    %105 = vector.shape_cast %104 : vector<1x4x128xf32> to vector<4x128xf32>
    %106 = vector.shape_cast %103 : vector<4x128xf32> to vector<1x4x128xf32>
    tpu.vector_store %arg5[%c0_97, %c0_98, %c0_99], %106 {strides = array<i32>} : memref<1x4x128xf32, #tpu.memory_space<vmem>>, vector<1x4x128xf32>,
    return
  }
  func.func @transform_0(%arg0: i32) -> (i32, i32, i32) {
    %c0_i32 = arith.constant 0 : i32
    %c0_i32_0 = arith.constant 0 : i32
    %c0_i32_1 = arith.constant 0 : i32
    return %arg0, %c0_i32, %c0_i32_0 : i32, i32, i32
  }
  func.func @transform_1(%arg0: i32) -> (i32, i32, i32) {
    %c0_i32 = arith.constant 0 : i32
    %c0_i32_0 = arith.constant 0 : i32
    %c0_i32_1 = arith.constant 0 : i32
    %c0_i32_2 = arith.constant 0 : i32
    return %c0_i32, %c0_i32_0, %c0_i32_1 : i32, i32, i32
  }
  func.func @transform_2(%arg0: i32) -> (i32, i32, i32, i32) {
    %c0_i32 = arith.constant 0 : i32
    %c0_i32_0 = arith.constant 0 : i32
    %c0_i32_1 = arith.constant 0 : i32
    %c0_i32_2 = arith.constant 0 : i32
    %c0_i32_3 = arith.constant 0 : i32
    return %c0_i32, %c0_i32_0, %c0_i32_1, %c0_i32_2 : i32, i32, i32, i32
  }
  func.func @transform_3(%arg0: i32) -> (i32, i32, i32) {
    %c0_i32 = arith.constant 0 : i32
    %c0_i32_0 = arith.constant 0 : i32
    %c0_i32_1 = arith.constant 0 : i32
    %c0_i32_2 = arith.constant 0 : i32
    return %c0_i32, %c0_i32_0, %c0_i32_1 : i32, i32, i32
  }
  func.func @transform_4(%arg0: i32) -> (i32, i32, i32) {
    %c0_i32 = arith.constant 0 : i32
    %c0_i32_0 = arith.constant 0 : i32
    %c0_i32_1 = arith.constant 0 : i32
    return %arg0, %c0_i32, %c0_i32_0 : i32, i32, i32
  }
}

</mosaic_0001>

<bundles_post_ra>
// kernel: tpu_custom_call.1
= control target key start
LH: loop header
LB: loop body
LE: loop exit
PB: predicated region body
PF: predicated region fallthrough
CT: control target
= control target key end

     0   :  { %9 = vsyncpa [#allocation4], 0  ;;  %s3497_s0 = inlined_call_operand.vmem [shape: f32[1,64,24], index: 0, kind: input, shape index: {}]   ;;  %s3498_s1 = inlined_call_operand.hbm [shape: f32[5,24,128], index: 1, kind: input, shape index: {}]   ;;  %s3499_s2 = inlined_call_operand.hbm [shape: f32[2,5,128,128], index: 2, kind: input, shape index: {}]   ;;  %s3500_s3 = inlined_call_operand.vmem [shape: f32[3,1,128], index: 3, kind: input, shape index: {}]   ;;  %s3501_s4 = inlined_call_operand.hbm [shape: f32[1,4,128], index: 4, kind: output, shape index: {}]  }
   0x1   :  { %10 = vsyncpa [#allocation7], 0 }
   0x2   :  { %11 = vsyncpa [#allocation5], 0  ;;  %s3161_s15 = smov [#allocation3]   ;;  %s3089_s19 = scalar_lea.hbm %s3498_s1, 1920 }
   0x3   :  { %s19_s16 = sshll.u32 %s3161_s15, 4  ;;  %p3090_p0 = scmp.ne.s32.totalorder %s3498_s1, %s3089_s19  ;;  %s20_s16 = int_to_ptr.vmem [resolvable:$true] %s19_s16 }
   0x4   :  { %p3093_p1 = scmp.lt.u32.totalorder %s3089_s19, %s3498_s1 }
   0x6   :  { %p3095_p2 = pnand %p3093_p1, %p3090_p0 }
   0x8   :  { %3098 = shalt.err (!%p3095_p2)
}
   0x9   :  { %s3099_s24 = scalar_lea.vmem %s20_s16, 1920  ;;  %p3104_p4 = scmp.lt.s32.totalorder %s20_s16, %s20_s16 }
   0xa   :  { %p3100_p3 = scmp.ne.s32.totalorder %s20_s16, %s3099_s24  ;;  %p3105_p5 = scmp.lt.s32.totalorder %s3099_s24, %s3099_s24 }
   0xc   :  { %p3106_p6 = por %p3105_p5, %p3104_p4 }
   0xe   :  { %p3107_p7 = pnand %p3106_p6, %p3100_p3 }
  0x10   :  { %3110 = shalt.err (!%p3107_p7)
}
  0x11   :  { %s3162_s25 = smov 128   ;;  %s3163_s26 = smov 8  }
  0x12   :  { %25 = dma.hbm_to_vmem [thread:$0]  %s3498_s1, 1920, %s20_s16, [#allocation4], %s3162_s25, %s3162_s25, %s3163_s26  }
  0x13   :  { %s3164_s29 = smov [#allocation6]   ;;  %s3111_s7 = scalar_lea.hbm %s3499_s2, 20480 }
  0x14   :  { %s31_s30 = sshll.u32 %s3164_s29, 4  ;;  %p3112_p8 = scmp.ne.s32.totalorder %s3499_s2, %s3111_s7  ;;  %s32_s30 = int_to_ptr.vmem [resolvable:$true] %s31_s30 }
  0x15   :  { %p3115_p9 = scmp.lt.u32.totalorder %s3111_s7, %s3499_s2 }
  0x17   :  { %p3117_p10 = pnand %p3115_p9, %p3112_p8 }
  0x19   :  { %3120 = shalt.err (!%p3117_p10)
}
  0x1a   :  { %s3121_s12 = scalar_lea.vmem %s32_s30, 20480  ;;  %p3126_p12 = scmp.lt.s32.totalorder %s32_s30, %s32_s30 }
  0x1b   :  { %p3122_p11 = scmp.ne.s32.totalorder %s32_s30, %s3121_s12  ;;  %p3127_p13 = scmp.lt.s32.totalorder %s3121_s12, %s3121_s12 }
  0x1d   :  { %p3128_p0 = por %p3127_p13, %p3126_p12 }
  0x1f   :  { %p3129_p1 = pnand %p3128_p0, %p3122_p11 }
  0x21   :  { %3132 = shalt.err (!%p3129_p1)
}
  0x22   :  { %37 = dma.hbm_to_vmem [thread:$0]  %s3499_s2, 20480, %s32_s30, [#allocation7], %s3162_s25, %s3162_s25, %s3163_s26  }
  0x23   :  { %3155 = dma.done.wait [#allocation4], 1920  }
  0x24   :  { %3156 = vsyncadd [#allocation4], 4294965376 }
  0x25   :  { %3157 = dma.done.wait [#allocation7], 20480  }
  0x26   :  { %3158 = vsyncadd [#allocation7], 4294946816  ;;  %v59_v0 = vld [vmem:[#allocation3 + $0x18] sm:$0xff]  ;;  %v60_v1 = vld [vmem:[#allocation3 + $0x20] sm:$0xff]  ;;  %vm70_vm0 = vcmask 1046528   ;;  %vm86_vm1 = vcmask 195584  }
  0x27   :  { %v61_v2 = vld [vmem:[#allocation3 + $0x28] sm:$0xff]  ;;  %v2688_v3 = vpack.c.bf16 %v60_v1, %v59_v0  ;;  %v3218_v4 = vld [vmem:[%s3497_s0] sm:$0xff]  ;;  %v3228_v6 = vld [vmem:[%s3497_s0 + $0x10] sm:$0xff]  ;;  %vm631_vm2 = vcmask 1043456   ;;  %vm333_vm3 = vcmask 1045504   ;;  %vm482_vm4 = vcmask 1044480  }
  0x28   :  { %v3223_v5 = vld [vmem:[%s3497_s0 + $0x8] sm:$0xff]  ;;  %v71_v7 = vrot.slane %v3218_v4, 1  ;;  %v74_v9 = vrot.slane %v3228_v6, 1  ;;  %v55_v10 = vld [vmem:[#allocation3] sm:$0xff]  ;;  %v3236_v12 = vld [vmem:[%s3497_s0 + $0x18] sm:$0xff]  ;;  %v632_v32 = vrot.slane %v3218_v4, 4 }
  0x29   :  { %v72_v8 = vrot.slane %v3223_v5, 1  ;;  %v56_v11 = vld [vmem:[#allocation3 + $0x8] sm:$0xff]  ;;  %2689 = vmatprep.subr.bf16.mxu0 %v2688_v3  ;;  %v76_v13 = vrot.slane %v3236_v12, 1  ;;  %v3242_v14 = vld [vmem:[%s3497_s0 + $0x20] sm:$0xff]  ;;  %v3258_v22 = vld [vmem:[%s3497_s0 + $0x30] sm:$0xff]  ;;  %v633_v33 = vrot.slane %v3223_v5, 4 }
  0x2a   :  { %2691 = vmatpush3.bf16.msra.mxu0 %v2688_v3  ;;  %v3248_v16 = vld [vmem:[%s3497_s0 + $0x28] sm:$0xff]  ;;  %v2692_v17 = vpack.c.bf16 %v56_v11, %v55_v10  ;;  %v78_v19 = vrot.slane %v3242_v14, 1  ;;  %v57_v23 = vld [vmem:[#allocation3 + $0x10] sm:$0xff]  ;;  %v3263_v24 = vld [vmem:[%s3497_s0 + $0x38] sm:$0xff]  ;;  %v82_v28 = vrot.slane %v3258_v22, 1  ;;  %v635_v36 = vrot.slane %v3228_v6, 4 }
  0x2b   :  { %v73_v15 = vsel %vm70_vm0, %v71_v7, %v72_v8  ;;  %2237 = vmatprep.subr.mxu0 %v61_v2  ;;  %v75_v18 = vsel %vm70_vm0, %v72_v8, %v74_v9  ;;  %v77_v20 = vsel %vm70_vm0, %v74_v9, %v76_v13  ;;  %v80_v21 = vrot.slane %v3248_v16, 1  ;;  %v330_v25 = vld [vmem:[#allocation3 + $0x30] sm:$0xff]  ;;  %v331_v26 = vld [vmem:[#allocation3 + $0x38] sm:$0xff]  ;;  %v845_v37 = vld [vmem:[#allocation6 + $0x88] sm:$0xff]  ;;  %s3165_s8 = smov [#allocation8]  }
  0x2c   :  { %2239 = vmatprep.mubr.msk.f32.mxu0 %vm86_vm1, %v73_v15  ;;  %v79_v27 = vsel %vm70_vm0, %v76_v13, %v78_v19  ;;  %v84_v30 = vrot.slane %v3263_v24, 1  ;;  %v2696_v31 = vpack.c.bf16 %v331_v26, %v330_v25  ;;  %v844_v34 = vld [vmem:[#allocation6 + $0x80] sm:$0xff]  ;;  %v846_v38 = vld [vmem:[#allocation6 + $0x90] sm:$0xff]  ;;  %v847_v39 = vld [vmem:[#allocation6 + $0x98] sm:$0xff]  ;;  %v3279_v41 = vsel %vm631_vm2, %v632_v32, %v633_v33  ;;  %s1933_s9 = sshll.u32 %s3165_s8, 4  ;;  %s1934_s9 = int_to_ptr.vmem [resolvable:$true] %s1933_s9 }
  0x2d   :  { %v81_v29 = vsel %vm70_vm0, %v78_v19, %v80_v21  ;;  %v83_v35 = vsel %vm70_vm0, %v80_v21, %v82_v28  ;;  %v637_v42 = vrot.slane %v3236_v12, 4  ;;  %v639_v43 = vrot.slane %v3242_v14, 4  ;;  %v332_v55 = vld [vmem:[#allocation3 + $0x40] sm:$0xff]  ;;  %v479_v56 = vld [vmem:[#allocation3 + $0x48] sm:$0xff]  ;;  %v480_v57 = vld [vmem:[#allocation3 + $0x50] sm:$0xff]  ;;  %s3133_s10 = scalar_lea.vmem %s1934_s9, 64  ;;  %p3138_p3 = scmp.lt.s32.totalorder %s1934_s9, %s1934_s9 }
  0x2e   :  { %2238 = vmatpush3.msra.mxu0 %v61_v2  ;;  %v85_v40 = vsel %vm70_vm0, %v82_v28, %v84_v30  ;;  %v3284_v44 = vsel %vm631_vm2, %v633_v33, %v635_v36  ;;  %v641_v45 = vrot.slane %v3248_v16, 4  ;;  %v643_v46 = vrot.slane %v3258_v22, 4  ;;  %v481_v7 = vld [vmem:[#allocation3 + $0x58] sm:$0xff]  ;;  %v628_v8 = vld [vmem:[#allocation3 + $0x60] sm:$0xff]  ;;  %v629_v9 = vld [vmem:[#allocation3 + $0x68] sm:$0xff]  ;;  %p3134_p2 = scmp.ne.s32.totalorder %s1934_s9, %s3133_s10  ;;  %p3139_p4 = scmp.lt.s32.totalorder %s3133_s10, %s3133_s10 }
  0x2f   :  { %2240 = vmatmul.mubr.msk.f32.vlgmr.msra.gmra.mrb[0].mxu0 %vm86_vm1, %v75_v18  ;;  %2693 = vmatprep.subr.bf16.mxu0 %v2692_v17  ;;  %v645_v47 = vrot.slane %v3263_v24, 4  ;;  %v3291_v48 = vsel %vm631_vm2, %v635_v36, %v637_v42  ;;  %v3294_v49 = vsel %vm631_vm2, %v637_v42, %v639_v43  ;;  %v2708_v50 = vpack.c.bf16 %v845_v37, %v844_v34  ;;  %v849_v32 = vld [vmem:[#allocation6 + $0xa8] sm:$0xff]  ;;  %v850_v34 = vld [vmem:[#allocation6 + $0xb0] sm:$0xff]  ;;  %v852_v37 = vld [vmem:[#allocation6 + $0xc0] sm:$0xff] }
  0x30   :  { %2695 = vmatpush3.bf16.msra.mxu0 %v2692_v17  ;;  %2242 = vmatprep.mubr.msk.f32.mxu0 %vm86_vm1, %v77_v20  ;;  %v2712_v51 = vpack.c.bf16 %v847_v39, %v846_v38  ;;  %v3298_v52 = vsel %vm631_vm2, %v639_v43, %v641_v45  ;;  %v3301_v53 = vsel %vm631_vm2, %v641_v45, %v643_v46  ;;  %v334_v59 = vrot.slane %v3218_v4, 2  ;;  %v853_v38 = vld [vmem:[#allocation6 + $0xc8] sm:$0xff]  ;;  %v856_v42 = vld [vmem:[#allocation6 + $0xe0] sm:$0xff]  ;;  %v858_v45 = vld [vmem:[#allocation6 + $0xf0] sm:$0xff]  ;;  %p3140_p5 = por %p3139_p4, %p3138_p3 }
  0x31   :  { %2255 = vmatprep.subr.mxu0 %v57_v23  ;;  %v3306_v54 = vsel %vm631_vm2, %v643_v46, %v645_v47  ;;  %2709 = vmatprep.subr.bf16.mxu1 %v2708_v50  ;;  %v2700_v58 = vpack.c.bf16 %v480_v57, %v479_v56  ;;  %v335_v60 = vrot.slane %v3223_v5, 2  ;;  %v337_v61 = vrot.slane %v3228_v6, 2  ;;  %v857_v43 = vld [vmem:[#allocation6 + $0xe8] sm:$0xff]  ;;  %v859_v46 = vld [vmem:[#allocation6 + $0xf8] sm:$0xff] }
  0x32   :  { %2711 = vmatpush3.bf16.msra.mxu1 %v2708_v50  ;;  %v339_v63 = vrot.slane %v3236_v12, 2  ;;  %v341_v1 = vrot.slane %v3242_v14, 2  ;;  %v343_v3 = vrot.slane %v3248_v16, 2  ;;  %v345_v11 = vrot.slane %v3258_v22, 2  ;;  %p3141_p6 = pnand %p3140_p5, %p3134_p2 }
  0x33   :  { %2243 = vmatmul.mubr.msk.f32.gmra.mrb[2].mxu0 %vm86_vm1, %v79_v27  ;;  %2713 = vmatprep.subr.bf16.mxu1 %v2712_v51  ;;  %v336_v62 = vsel %vm333_vm3, %v334_v59, %v335_v60  ;;  %v338_v0 = vsel %vm333_vm3, %v335_v60, %v337_v61  ;;  %v347_v15 = vrot.slane %v3263_v24, 2  ;;  %v2704_v17 = vpack.c.bf16 %v629_v9, %v628_v8 }
  0x34   :  { %2245 = vmatprep.mubr.msk.f32.mxu0 %vm86_vm1, %v81_v29  ;;  %2256 = vmatpush3.msra.mxu0 %v57_v23  ;;  %v340_v2 = vsel %vm333_vm3, %v337_v61, %v339_v63  ;;  %v342_v10 = vsel %vm333_vm3, %v339_v63, %v341_v1  ;;  %v344_v13 = vsel %vm333_vm3, %v341_v1, %v343_v3  ;;  %v483_v20 = vrot.slane %v3218_v4, 3  ;;  %v630_v29 = vld [vmem:[#allocation3 + $0x70] sm:$0xff] }
  0x35   :  { %2697 = vmatprep.subr.bf16.mxu0 %v2696_v31  ;;  %v346_v18 = vsel %vm333_vm3, %v343_v3, %v345_v11  ;;  %v348_v19 = vsel %vm333_vm3, %v345_v11, %v347_v15  ;;  %v484_v21 = vrot.slane %v3223_v5, 3  ;;  %v486_v23 = vrot.slane %v3228_v6, 3 }
  0x36   :  { %2715 = vmatpush3.bf16.msra.mxu1 %v2712_v51  ;;  %v488_v26 = vrot.slane %v3236_v12, 3  ;;  %v492_v28 = vrot.slane %v3248_v16, 3  ;;  %v2724_v39 = vpack.c.bf16 %v853_v38, %v852_v37  ;;  %v1983_v51 = vld [vmem:[%s3500_s3] ss:$0 sm:$0xff] }
  0x37   :  { %2246 = vmatmul.mubr.msk.f32.gmra.mrb[4].mxu0 %vm86_vm1, %v83_v35  ;;  %v485_v25 = vsel %vm482_vm4, %v483_v20, %v484_v21  ;;  %v851_v35 = vld [vmem:[#allocation6 + $0xb8] sm:$0xff] }
  0x38   :  { %2248 = vmatprep.mubr.msk.f32.mxu0 %vm86_vm1, %v85_v40  ;;  %v489_v27 = vsel %vm482_vm4, %v486_v23, %v488_v26  ;;  %v2720_v36 = vpack.c.bf16 %v851_v35, %v850_v34  ;;  %v854_v40 = vld [vmem:[#allocation6 + $0xd0] sm:$0xff] }
  0x3b   :  { %2249 = vmatmul.mubr.msk.f32.gmra.mrb[6].mxu0 %vm86_vm1, %v84_v30 }
  0x3c   :  { %2257 = vmatprep.mubr.msk.f32.mxu0 %vm86_vm1, %v3218_v4  ;;  %v487_v4 = vsel %vm482_vm4, %v484_v21, %v486_v23 }
  0x3f   :  { %2258 = vmatmul.mubr.msk.f32.vlgmr.msra.gmra.mrb[0].mxu0 %vm86_vm1, %v3223_v5  ;;  %v490_v5 = vrot.slane %v3242_v14, 3 }
  0x40   :  { %2699 = vmatpush3.bf16.msra.mxu0 %v2696_v31  ;;  %2260 = vmatprep.mubr.msk.f32.mxu0 %vm86_vm1, %v3228_v6  ;;  %v496_v31 = vrot.slane %v3263_v24, 3 }
  0x41   :  { %2273 = vmatprep.subr.mxu0 %v332_v55  ;;  %v491_v6 = vsel %vm482_vm4, %v488_v26, %v490_v5  ;;  %v493_v30 = vsel %vm482_vm4, %v490_v5, %v492_v28 }
  0x43   :  { %2261 = vmatmul.mubr.msk.f32.gmra.mrb[2].mxu0 %vm86_vm1, %v3236_v12  ;;  %v494_v12 = vrot.slane %v3258_v22, 3 }
  0x44   :  { %2263 = vmatprep.mubr.msk.f32.mxu0 %vm86_vm1, %v3242_v14  ;;  %2274 = vmatpush3.msra.mxu0 %v332_v55 }
  0x45   :  { %2701 = vmatprep.subr.bf16.mxu0 %v2700_v58  ;;  %v495_v14 = vsel %vm482_vm4, %v492_v28, %v494_v12 }
  0x47   :  { %2264 = vmatmul.mubr.msk.f32.gmra.mrb[4].mxu0 %vm86_vm1, %v3248_v16  ;;  %v497_v16 = vsel %vm482_vm4, %v494_v12, %v496_v31 }
  0x48   :  { %2266 = vmatprep.mubr.msk.f32.mxu0 %vm86_vm1, %v3258_v22  ;;  %v848_v22 = vld [vmem:[#allocation6 + $0xa0] sm:$0xff] }
  0x49   :  { %v2716_v33 = vpack.c.bf16 %v849_v32, %v848_v22 }
  0x4b   :  { %2267 = vmatmul.mubr.msk.f32.gmra.mrb[6].mxu0 %vm86_vm1, %v3263_v24  ;;  %2717 = vmatprep.subr.bf16.mxu1 %v2716_v33 }
  0x4c   :  { %2275 = vmatprep.mubr.msk.f32.mxu0 %vm86_vm1, %v336_v62  ;;  %2719 = vmatpush3.bf16.msra.mxu1 %v2716_v33 }
  0x4d   :  { %2721 = vmatprep.subr.bf16.mxu1 %v2720_v36 }
  0x4f   :  { %2276 = vmatmul.mubr.msk.f32.vlgmr.msra.gmra.mrb[0].mxu0 %vm86_vm1, %v338_v0 }
  0x50   :  { %2703 = vmatpush3.bf16.msra.mxu0 %v2700_v58  ;;  %2278 = vmatprep.mubr.msk.f32.mxu0 %vm86_vm1, %v340_v2 }
  0x51   :  { %2291 = vmatprep.subr.mxu0 %v481_v7  ;;  %2723 = vmatpush3.bf16.msra.mxu1 %v2720_v36 }
  0x52   :  { %2725 = vmatprep.subr.bf16.mxu1 %v2724_v39 }
  0x53   :  { %2279 = vmatmul.mubr.msk.f32.gmra.mrb[2].mxu0 %vm86_vm1, %v342_v10 }
  0x54   :  { %2281 = vmatprep.mubr.msk.f32.mxu0 %vm86_vm1, %v344_v13  ;;  %2292 = vmatpush3.msra.mxu0 %v481_v7 }
  0x55   :  { %2705 = vmatprep.subr.bf16.mxu0 %v2704_v17  ;;  %2727 = vmatpush3.bf16.msra.mxu1 %v2724_v39 }
  0x57   :  { %2282 = vmatmul.mubr.msk.f32.gmra.mrb[4].mxu0 %vm86_vm1, %v346_v18 }
  0x58   :  { %2284 = vmatprep.mubr.msk.f32.mxu0 %vm86_vm1, %v348_v19 }
  0x5b   :  { %2285 = vmatmul.mubr.msk.f32.gmra.mrb[6].mxu0 %vm86_vm1, %v347_v15 }
  0x5c   :  { %2293 = vmatprep.mubr.msk.f32.mxu0 %vm86_vm1, %v485_v25 }
  0x5f   :  { %2294 = vmatmul.mubr.msk.f32.vlgmr.msra.gmra.mrb[0].mxu0 %vm86_vm1, %v487_v4 }
  0x60   :  { %2707 = vmatpush3.bf16.msra.mxu0 %v2704_v17  ;;  %2296 = vmatprep.mubr.msk.f32.mxu0 %vm86_vm1, %v489_v27 }
  0x61   :  { %2309 = vmatprep.subr.mxu0 %v630_v29 }
  0x63   :  { %2297 = vmatmul.mubr.msk.f32.gmra.mrb[2].mxu0 %vm86_vm1, %v491_v6 }
  0x64   :  { %2299 = vmatprep.mubr.msk.f32.mxu0 %vm86_vm1, %v493_v30  ;;  %2310 = vmatpush3.msra.mxu0 %v630_v29 }
  0x67   :  { %2300 = vmatmul.mubr.msk.f32.gmra.mrb[4].mxu0 %vm86_vm1, %v495_v14  ;;  %v829_v14 = vld [vmem:[#allocation6 + $0x10] sm:$0xff] }
  0x68   :  { %2302 = vmatprep.mubr.msk.f32.mxu0 %vm86_vm1, %v497_v16  ;;  %v830_v16 = vld [vmem:[#allocation6 + $0x18] sm:$0xff] }
  0x69   :  { %v2744_v36 = vpack.c.bf16 %v830_v16, %v829_v14  ;;  %v1052_v14 = vld [vmem:[#allocation6 + $0x130] sm:$0xff]  ;;  %v1053_v16 = vld [vmem:[#allocation6 + $0x138] sm:$0xff] }
  0x6b   :  { %2303 = vmatmul.mubr.msk.f32.gmra.mrb[6].mxu0 %vm86_vm1, %v496_v31 }
  0x6c   :  { %2311 = vmatprep.mubr.msk.f32.mxu0 %vm86_vm1, %v3279_v41  ;;  %v855_v41 = vld [vmem:[#allocation6 + $0xd8] sm:$0xff] }
  0x6d   :  { %v2728_v24 = vpack.c.bf16 %v855_v41, %v854_v40  ;;  %v831_v41 = vld [vmem:[#allocation6 + $0x20] sm:$0xff] }
  0x6f   :  { %2312 = vmatmul.mubr.msk.f32.vlgmr.msra.gmra.mrb[0].mxu0 %vm86_vm1, %v3284_v44  ;;  %2729 = vmatprep.subr.bf16.mxu1 %v2728_v24  ;;  %v2732_v44 = vpack.c.bf16 %v857_v43, %v856_v42 }
  0x70   :  { %2314 = vmatprep.mubr.msk.f32.mxu0 %vm86_vm1, %v3291_v48  ;;  %2731 = vmatpush3.bf16.msra.mxu1 %v2728_v24  ;;  %v827_v48 = vld [vmem:[#allocation6] sm:$0xff]  ;;  %v832_v24 = vld [vmem:[#allocation6 + $0x28] sm:$0xff] }
  0x71   :  { %2733 = vmatprep.subr.bf16.mxu1 %v2732_v44 }
  0x73   :  { %2315 = vmatmul.mubr.msk.f32.gmra.mrb[2].mxu0 %vm86_vm1, %v3294_v49  ;;  %v828_v49 = vld [vmem:[#allocation6 + $0x8] sm:$0xff] }
  0x74   :  { %2317 = vmatprep.mubr.msk.f32.mxu0 %vm86_vm1, %v3298_v52  ;;  %2735 = vmatpush3.bf16.msra.mxu1 %v2732_v44  ;;  %v3388_v50 = vpack.c.bf16 %v828_v49, %v827_v48  ;;  %v833_v49 = vld [vmem:[#allocation6 + $0x30] sm:$0xff] }
  0x77   :  { %2318 = vmatmul.mubr.msk.f32.gmra.mrb[4].mxu0 %vm86_vm1, %v3301_v53 }
  0x78   :  { %2320 = vmatprep.mubr.msk.f32.mxu0 %vm86_vm1, %v3306_v54 }
  0x7b   :  { %2321 = vmatmul.mubr.msk.f32.gmra.mrb[6].mxu0 %vm86_vm1, %v645_v47  ;;  %v2736_v47 = vpack.c.bf16 %v859_v46, %v858_v45 }
  0x7d   :  { %2737 = vmatprep.subr.bf16.mxu1 %v2736_v47 }
  0x7e   :  { %2739 = vmatpush3.bf16.msra.mxu1 %v2736_v47  ;;  %v2748_v47 = vpack.c.bf16 %v832_v24, %v831_v41  ;;  %v1059_v41 = vld [vmem:[#allocation6 + $0x168] sm:$0xff] }
  0x7f   :  { %2741 = vmatprep.subr.bf16.mxu1 %v3388_v50 }
 0x142   :  { %v2313_v52 = vpop.f32.mrb[0].mxu0 }
 0x143   :  { %v783_v53 = vadd.f32 %v2313_v52, %v1983_v51  ;;  %v729_v54 = vpop.f32.mrb[1].mxu0 }
 0x144   :  { %v782_v55 = vadd.f32 %v1983_v51, %v729_v54  ;;  %v1425_v54 = vld [vmem:[#allocation6 + $0x288] sm:$0xff] }
 0x145   :  { %v791_v56 = vmax.f32 %v783_v53, 0.0  ;;  %v1424_v53 = vld [vmem:[#allocation6 + $0x280] sm:$0xff] }
 0x146   :  { %v790_v57 = vmax.f32 %v782_v55, 0.0  ;;  %v2316_v58 = vpop.f32.mrb[2].mxu0  ;;  %v1426_v55 = vld [vmem:[#allocation6 + $0x290] sm:$0xff] }
 0x147   :  { %799 = vst [vmem:[#allocation2 + $0x8] sm:$0xff] %v791_v56  ;;  %v785_v59 = vadd.f32 %v2316_v58, %v1983_v51  ;;  %v739_v60 = vpop.f32.mrb[3].mxu0  ;;  %v2900_v56 = vpack.c.bf16 %v1425_v54, %v1424_v53 }
 0x148   :  { %798 = vst [vmem:[#allocation2] sm:$0xff] %v790_v57  ;;  %v784_v61 = vadd.f32 %v1983_v51, %v739_v60  ;;  %v1427_v57 = vld [vmem:[#allocation6 + $0x298] sm:$0xff]  ;;  %v1428_v60 = vld [vmem:[#allocation6 + $0x2a0] sm:$0xff] }
 0x149   :  { %v793_v62 = vmax.f32 %v785_v59, 0.0  ;;  %v2904_v59 = vpack.c.bf16 %v1427_v57, %v1426_v55  ;;  %2901 = vmatprep.subr.bf16.mxu0 %v2900_v56  ;;  %v1165_v55 = vld [vmem:[#allocation6 + $0x190] sm:$0xff] }
 0x14a   :  { %v792_v63 = vmax.f32 %v784_v61, 0.0  ;;  %v2319_v0 = vpop.f32.mrb[4].mxu0  ;;  %v1429_v61 = vld [vmem:[#allocation6 + $0x2a8] sm:$0xff]  ;;  %2903 = vmatpush3.bf16.msra.mxu0 %v2900_v56  ;;  %v1166_v56 = vld [vmem:[#allocation6 + $0x198] sm:$0xff] }
 0x14b   :  { %801 = vst [vmem:[#allocation2 + $0x18] sm:$0xff] %v793_v62  ;;  %v787_v1 = vadd.f32 %v2319_v0, %v1983_v51  ;;  %v749_v2 = vpop.f32.mrb[5].mxu0  ;;  %v835_v62 = vld [vmem:[#allocation6 + $0x40] sm:$0xff]  ;;  %2905 = vmatprep.subr.bf16.mxu0 %v2904_v59  ;;  %v2908_v0 = vpack.c.bf16 %v1429_v61, %v1428_v60  ;;  %v1168_v61 = vld [vmem:[#allocation6 + $0x1a8] sm:$0xff] }
 0x14c   :  { %800 = vst [vmem:[#allocation2 + $0x10] sm:$0xff] %v792_v63  ;;  %v786_v3 = vadd.f32 %v1983_v51, %v749_v2  ;;  %v836_v63 = vld [vmem:[#allocation6 + $0x48] sm:$0xff]  ;;  %v1430_v2 = vld [vmem:[#allocation6 + $0x2b0] sm:$0xff]  ;;  %v1167_v60 = vld [vmem:[#allocation6 + $0x1a0] sm:$0xff] }
 0x14d   :  { %v795_v7 = vmax.f32 %v787_v1, 0.0  ;;  %v2756_v1 = vpack.c.bf16 %v836_v63, %v835_v62  ;;  %v2812_v63 = vpack.c.bf16 %v1168_v61, %v1167_v60  ;;  %v1436_v60 = vld [vmem:[#allocation6 + $0x2e0] sm:$0xff]  ;;  %v1437_v61 = vld [vmem:[#allocation6 + $0x2e8] sm:$0xff] }
 0x14e   :  { %v794_v8 = vmax.f32 %v786_v3, 0.0  ;;  %v2322_v9 = vpop.f32.mrb[6].mxu0  ;;  %v1431_v3 = vld [vmem:[#allocation6 + $0x2b8] sm:$0xff]  ;;  %2907 = vmatpush3.bf16.msra.mxu0 %v2904_v59 }
 0x14f   :  { %803 = vst [vmem:[#allocation2 + $0x28] sm:$0xff] %v795_v7  ;;  %v789_v10 = vadd.f32 %v2322_v9, %v1983_v51  ;;  %v759_v11 = vpop.f32.mrb[7].mxu0  ;;  %v806_v13 = vld [vmem:[#allocation2] ss:$2 sm:$0xff]  ;;  %v814_v15 = vld [vmem:[#allocation2 + $0x1] ss:$2 sm:$0xff]  ;;  %2909 = vmatprep.subr.bf16.mxu0 %v2908_v0  ;;  %v2912_v9 = vpack.c.bf16 %v1431_v3, %v1430_v2 }
 0x150   :  { %802 = vst [vmem:[#allocation2 + $0x20] sm:$0xff] %v794_v8  ;;  %v788_v17 = vadd.f32 %v1983_v51, %v759_v11  ;;  %v3394_v19 = vmax.f32 %v806_v13, %v814_v15  ;;  %v834_v51 = vld [vmem:[#allocation6 + $0x38] sm:$0xff]  ;;  %v837_v7 = vld [vmem:[#allocation6 + $0x50] sm:$0xff]  ;;  %v839_v11 = vld [vmem:[#allocation6 + $0x60] sm:$0xff] }
 0x151   :  { %v797_v18 = vmax.f32 %v789_v10, 0.0  ;;  %v2752_v58 = vpack.c.bf16 %v834_v51, %v833_v49  ;;  %v838_v8 = vld [vmem:[#allocation6 + $0x58] sm:$0xff]  ;;  %v840_v13 = vld [vmem:[#allocation6 + $0x68] sm:$0xff]  ;;  %v1163_v49 = vld [vmem:[#allocation6 + $0x180] sm:$0xff] }
 0x152   :  { %v796_v20 = vmax.f32 %v788_v17, 0.0  ;;  %v864_v26 = vrot.slane %v3394_v19, 1  ;;  %v1179_v5 = vrot.slane %v3394_v19, 3  ;;  %v1296_v12 = vrot.slane %v3394_v19, 4  ;;  %2911 = vmatpush3.bf16.msra.mxu0 %v2908_v0  ;;  %v841_v17 = vld [vmem:[#allocation6 + $0x70] sm:$0xff]  ;;  %v1164_v51 = vld [vmem:[#allocation6 + $0x188] sm:$0xff] }
 0x153   :  { %805 = vst [vmem:[#allocation2 + $0x38] sm:$0xf] %v797_v18  ;;  %v808_v21 = vld [vmem:[#allocation2 + $0x10] ss:$2 sm:$0xff]  ;;  %v816_v23 = vld [vmem:[#allocation2 + $0x11] ss:$2 sm:$0xff]  ;;  %v2760_v10 = vpack.c.bf16 %v838_v8, %v837_v7  ;;  %2913 = vmatprep.subr.bf16.mxu0 %v2912_v9  ;;  %v2764_v15 = vpack.c.bf16 %v840_v13, %v839_v11  ;;  %v2804_v53 = vpack.c.bf16 %v1164_v51, %v1163_v49 }
 0x154   :  { %804 = vst [vmem:[#allocation2 + $0x30] sm:$0xff] %v796_v20  ;;  %v3396_v25 = vmax.f32 %v808_v21, %v816_v23  ;;  %v842_v18 = vld [vmem:[#allocation6 + $0x78] sm:$0xff]  ;;  %v1046_v21 = vld [vmem:[#allocation6 + $0x100] sm:$0xff]  ;;  %v1047_v23 = vld [vmem:[#allocation6 + $0x108] sm:$0xff] }
 0x155   :  { %v2768_v20 = vpack.c.bf16 %v842_v18, %v841_v17  ;;  %v1169_v0 = vld [vmem:[#allocation6 + $0x1b0] sm:$0xff]  ;;  %v1171_v2 = vld [vmem:[#allocation6 + $0x1c0] sm:$0xff]  ;;  %v1172_v3 = vld [vmem:[#allocation6 + $0x1c8] sm:$0xff] }
 0x156   :  { %v865_v4 = vrot.slane %v3396_v25, 1  ;;  %v1180_v27 = vrot.slane %v3396_v25, 3  ;;  %v1297_v28 = vrot.slane %v3396_v25, 4  ;;  %2915 = vmatpush3.bf16.msra.mxu0 %v2912_v9  ;;  %v2820_v7 = vpack.c.bf16 %v1172_v3, %v1171_v2  ;;  %v1173_v8 = vld [vmem:[#allocation6 + $0x1d0] sm:$0xff]  ;;  %v1174_v9 = vld [vmem:[#allocation6 + $0x1d8] sm:$0xff]  ;;  %v1175_v11 = vld [vmem:[#allocation6 + $0x1e0] sm:$0xff] }
 0x157   :  { %v810_v29 = vld [vmem:[#allocation2 + $0x20] ss:$2 sm:$0xff]  ;;  %v818_v6 = vld [vmem:[#allocation2 + $0x21] ss:$2 sm:$0xff]  ;;  %v1178_v18 = vld [vmem:[#allocation6 + $0x1f8] sm:$0xff] }
 0x158   :  { %v866_v30 = vsel %vm70_vm0, %v864_v26, %v865_v4  ;;  %v3405_v31 = vmax.f32 %v810_v29, %v818_v6  ;;  %v3408_v22 = vsel %vm482_vm4, %v1179_v5, %v1180_v27  ;;  %v3411_v32 = vsel %vm631_vm2, %v1296_v12, %v1297_v28  ;;  %v1049_v5 = vld [vmem:[#allocation6 + $0x118] sm:$0xff]  ;;  %v1051_v29 = vld [vmem:[#allocation6 + $0x128] sm:$0xff]  ;;  %v1177_v17 = vld [vmem:[#allocation6 + $0x1f0] sm:$0xff] }
 0x159   :  { %2355 = vmatprep.mubr.f32.mxu1 %v866_v30  ;;  %v2772_v26 = vpack.c.bf16 %v1047_v23, %v1046_v21  ;;  %v1063_v6 = vrot.slane %v3396_v25, 2  ;;  %v1062_v12 = vrot.slane %v3394_v19, 2  ;;  %v1176_v13 = vld [vmem:[#allocation6 + $0x1e8] sm:$0xff]  ;;  %v1432_v51 = vld [vmem:[#allocation6 + $0x2c0] sm:$0xff]  ;;  %v1439_v2 = vld [vmem:[#allocation6 + $0x2f8] sm:$0xff] }
 0x15a   :  { %v867_v33 = vrot.slane %v3405_v31, 1  ;;  %v1182_v34 = vrot.slane %v3405_v31, 3  ;;  %v1299_v35 = vrot.slane %v3405_v31, 4  ;;  %v1065_v54 = vrot.slane %v3405_v31, 2  ;;  %v1281_v21 = vld [vmem:[#allocation6 + $0x208] sm:$0xff]  ;;  %v1453_v3 = vld [vmem:[#allocation6 + $0x360] sm:$0xff] }
 0x15b   :  { %v812_v37 = vld [vmem:[#allocation2 + $0x30] ss:$2 sm:$0x3f]  ;;  %v820_v38 = vld [vmem:[#allocation2 + $0x31] ss:$2 sm:$0x3f] }
 0x15c   :  { %v868_v39 = vsel %vm70_vm0, %v865_v4, %v867_v33  ;;  %v3417_v40 = vmax.f32 %v812_v37, %v820_v38  ;;  %v3420_v42 = vsel %vm482_vm4, %v1180_v27, %v1182_v34  ;;  %v3423_v43 = vsel %vm631_vm2, %v1297_v28, %v1299_v35  ;;  %v1048_v4 = vld [vmem:[#allocation6 + $0x110] sm:$0xff]  ;;  %v1050_v28 = vld [vmem:[#allocation6 + $0x120] sm:$0xff]  ;;  %v1057_v38 = vld [vmem:[#allocation6 + $0x158] sm:$0xff] }
 0x15d   :  { %2356 = vmatmul.mubr.f32.vlgmr.msra.gmra.mrb[0].mxu1 %v868_v39  ;;  %v2776_v27 = vpack.c.bf16 %v1049_v5, %v1048_v4  ;;  %v2780_v30 = vpack.c.bf16 %v1051_v29, %v1050_v28  ;;  %v1056_v37 = vld [vmem:[#allocation6 + $0x150] sm:$0xff]  ;;  %v1058_v39 = vld [vmem:[#allocation6 + $0x160] sm:$0xff]  ;;  %v1066_v59 = vsel %vm333_vm3, %v1063_v6, %v1065_v54  ;;  %v1283_v4 = vld [vmem:[#allocation6 + $0x218] sm:$0xff] }
 0x15e   :  { %2743 = vmatpush3.bf16.msra.mxu1 %v3388_v50  ;;  %v869_v44 = vrot.slane %v3417_v40, 1  ;;  %v1184_v45 = vrot.slane %v3417_v40, 3  ;;  %v1301_v46 = vrot.slane %v3417_v40, 4  ;;  %v2796_v24 = vpack.c.bf16 %v1059_v41, %v1058_v39  ;;  %v1285_v28 = vld [vmem:[#allocation6 + $0x228] sm:$0xff]  ;;  %v1443_v41 = vld [vmem:[#allocation6 + $0x310] sm:$0xff] }
 0x15f   :  { %2745 = vmatprep.subr.bf16.mxu1 %v2744_v36  ;;  %v1067_v57 = vrot.slane %v3417_v40, 2 }
 0x160   :  { %v870_v48 = vsel %vm70_vm0, %v867_v33, %v869_v44  ;;  %v3433_v52 = vsel %vm482_vm4, %v1182_v34, %v1184_v45  ;;  %v3438_v50 = vsel %vm631_vm2, %v1299_v35, %v1301_v46  ;;  %v1064_v33 = vsel %vm333_vm3, %v1062_v12, %v1063_v6  ;;  %v1054_v35 = vld [vmem:[#allocation6 + $0x140] sm:$0xff]  ;;  %v1286_v6 = vld [vmem:[#allocation6 + $0x230] sm:$0xff]  ;;  %v1287_v12 = vld [vmem:[#allocation6 + $0x238] sm:$0xff] }
 0x161   :  { %2358 = vmatprep.mubr.f32.mxu1 %v870_v48  ;;  %v2784_v34 = vpack.c.bf16 %v1053_v16, %v1052_v14  ;;  %v1068_v62 = vsel %vm333_vm3, %v1065_v54, %v1067_v57  ;;  %v1288_v14 = vld [vmem:[#allocation6 + $0x240] sm:$0xff]  ;;  %v1289_v16 = vld [vmem:[#allocation6 + $0x248] sm:$0xff] }
 0x162   :  { %2747 = vmatpush3.bf16.msra.mxu1 %v2744_v36  ;;  %v1055_v36 = vld [vmem:[#allocation6 + $0x148] sm:$0xff] }
 0x163   :  { %2359 = vmatmul.mubr.f32.gmra.mrb[2].mxu1 %v869_v44  ;;  %2749 = vmatprep.subr.bf16.mxu1 %v2748_v47  ;;  %v1060_v44 = vld [vmem:[#allocation6 + $0x170] sm:$0xff] }
 0x164   :  { %2393 = vmatprep.mubr.f32.mxu1 %v3394_v19  ;;  %v2792_v19 = vpack.c.bf16 %v1057_v38, %v1056_v37  ;;  %v1295_v37 = vld [vmem:[#allocation6 + $0x278] sm:$0xff]  ;;  %v1441_v38 = vld [vmem:[#allocation6 + $0x300] sm:$0xff] }
 0x166   :  { %2751 = vmatpush3.bf16.msra.mxu1 %v2748_v47  ;;  %v1061_v47 = vld [vmem:[#allocation6 + $0x178] sm:$0xff] }
 0x167   :  { %2753 = vmatprep.subr.bf16.mxu1 %v2752_v58  ;;  %v2800_v48 = vpack.c.bf16 %v1061_v47, %v1060_v44  ;;  %v1445_v47 = vld [vmem:[#allocation6 + $0x320] sm:$0xff] }
 0x16a   :  { %2755 = vmatpush3.bf16.msra.mxu1 %v2752_v58  ;;  %v2808_v58 = vpack.c.bf16 %v1166_v56, %v1165_v55  ;;  %v1447_v55 = vld [vmem:[#allocation6 + $0x330] sm:$0xff]  ;;  %v1448_v56 = vld [vmem:[#allocation6 + $0x338] sm:$0xff] }
 0x16b   :  { %2757 = vmatprep.subr.bf16.mxu1 %v2756_v1 }
 0x16e   :  { %2759 = vmatpush3.bf16.msra.mxu1 %v2756_v1 }
 0x16f   :  { %2761 = vmatprep.subr.bf16.mxu1 %v2760_v10 }
 0x172   :  { %2763 = vmatpush3.bf16.msra.mxu1 %v2760_v10  ;;  %v2824_v10 = vpack.c.bf16 %v1174_v9, %v1173_v8  ;;  %v1454_v8 = vld [vmem:[#allocation6 + $0x368] sm:$0xff] }
 0x173   :  { %2765 = vmatprep.subr.bf16.mxu1 %v2764_v15  ;;  %v2892_v9 = vpack.c.bf16 %v1454_v8, %v1453_v3  ;;  %v1718_v3 = vld [vmem:[#allocation6 + $0x420] sm:$0xff] }
 0x176   :  { %2767 = vmatpush3.bf16.msra.mxu1 %v2764_v15  ;;  %v2828_v15 = vpack.c.bf16 %v1176_v13, %v1175_v11  ;;  %v1616_v11 = vld [vmem:[#allocation6 + $0x388] sm:$0xff]  ;;  %v1455_v13 = vld [vmem:[#allocation6 + $0x370] sm:$0xff] }
 0x177   :  { %2769 = vmatprep.subr.bf16.mxu1 %v2768_v20 }
 0x17a   :  { %2771 = vmatpush3.bf16.msra.mxu1 %v2768_v20  ;;  %v1280_v20 = vld [vmem:[#allocation6 + $0x200] sm:$0xff] }
 0x17b   :  { %2773 = vmatprep.subr.bf16.mxu1 %v2772_v26  ;;  %v2836_v23 = vpack.c.bf16 %v1281_v21, %v1280_v20 }
 0x17d   :  { %2394 = vmatmul.mubr.f32.vlgmr.msra.gmra.mrb[0].mxu1 %v3396_v25  ;;  %v2788_v25 = vpack.c.bf16 %v1055_v36, %v1054_v35  ;;  %v1292_v35 = vld [vmem:[#allocation6 + $0x260] sm:$0xff]  ;;  %v1293_v36 = vld [vmem:[#allocation6 + $0x268] sm:$0xff] }
 0x17e   :  { %2396 = vmatprep.mubr.f32.mxu1 %v3405_v31  ;;  %2775 = vmatpush3.bf16.msra.mxu1 %v2772_v26  ;;  %v1170_v31 = vld [vmem:[#allocation6 + $0x1b8] sm:$0xff]  ;;  %v1282_v26 = vld [vmem:[#allocation6 + $0x210] sm:$0xff] }
 0x17f   :  { %2777 = vmatprep.subr.bf16.mxu1 %v2776_v27  ;;  %v2816_v1 = vpack.c.bf16 %v1170_v31, %v1169_v0  ;;  %v2840_v5 = vpack.c.bf16 %v1283_v4, %v1282_v26  ;;  %v1452_v0 = vld [vmem:[#allocation6 + $0x358] sm:$0xff] }
 0x181   :  { %2397 = vmatmul.mubr.f32.gmra.mrb[2].mxu1 %v3417_v40 }
 0x182   :  { %2779 = vmatpush3.bf16.msra.mxu1 %v2776_v27  ;;  %2431 = vmatprep.mubr.f32.mxu1 %v1064_v33  ;;  %v1284_v27 = vld [vmem:[#allocation6 + $0x220] sm:$0xff]  ;;  %v1290_v33 = vld [vmem:[#allocation6 + $0x250] sm:$0xff] }
 0x183   :  { %2781 = vmatprep.subr.bf16.mxu1 %v2780_v30  ;;  %v2844_v29 = vpack.c.bf16 %v1285_v28, %v1284_v27 }
 0x186   :  { %2783 = vmatpush3.bf16.msra.mxu1 %v2780_v30  ;;  %v2848_v30 = vpack.c.bf16 %v1287_v12, %v1286_v6 }
 0x187   :  { %2785 = vmatprep.subr.bf16.mxu1 %v2784_v34 }
 0x18a   :  { %2787 = vmatpush3.bf16.msra.mxu1 %v2784_v34 }
 0x18b   :  { %2789 = vmatprep.subr.bf16.mxu1 %v2788_v25 }
 0x18e   :  { %2791 = vmatpush3.bf16.msra.mxu1 %v2788_v25  ;;  %v1294_v25 = vld [vmem:[#allocation6 + $0x270] sm:$0xff] }
 0x18f   :  { %2793 = vmatprep.subr.bf16.mxu1 %v2792_v19 }
 0x192   :  { %2795 = vmatpush3.bf16.msra.mxu1 %v2792_v19  ;;  %v1442_v19 = vld [vmem:[#allocation6 + $0x308] sm:$0xff] }
 0x193   :  { %2797 = vmatprep.subr.bf16.mxu1 %v2796_v24  ;;  %v2868_v39 = vpack.c.bf16 %v1442_v19, %v1441_v38 }
 0x196   :  { %2799 = vmatpush3.bf16.msra.mxu1 %v2796_v24  ;;  %v1444_v24 = vld [vmem:[#allocation6 + $0x318] sm:$0xff] }
 0x197   :  { %2801 = vmatprep.subr.bf16.mxu1 %v2800_v48  ;;  %v2872_v44 = vpack.c.bf16 %v1444_v24, %v1443_v41 }
 0x19a   :  { %2803 = vmatpush3.bf16.msra.mxu1 %v2800_v48  ;;  %v1446_v48 = vld [vmem:[#allocation6 + $0x328] sm:$0xff] }
 0x19b   :  { %2805 = vmatprep.subr.bf16.mxu1 %v2804_v53  ;;  %v2876_v49 = vpack.c.bf16 %v1446_v48, %v1445_v47  ;;  %v1621_v47 = vld [vmem:[#allocation6 + $0x3b0] sm:$0xff]  ;;  %v1622_v48 = vld [vmem:[#allocation6 + $0x3b8] sm:$0xff] }
 0x19d   :  { %2432 = vmatmul.mubr.f32.vlgmr.msra.gmra.mrb[0].mxu1 %v1066_v59 }
 0x19e   :  { %2434 = vmatprep.mubr.f32.mxu1 %v1068_v62  ;;  %2807 = vmatpush3.bf16.msra.mxu1 %v2804_v53  ;;  %v1433_v53 = vld [vmem:[#allocation6 + $0x2c8] sm:$0xff]  ;;  %v2924_v62 = vpack.c.bf16 %v1437_v61, %v1436_v60  ;;  %v1714_v60 = vld [vmem:[#allocation6 + $0x400] sm:$0xff] }
 0x19f   :  { %2809 = vmatprep.subr.bf16.mxu1 %v2808_v58  ;;  %v2916_v54 = vpack.c.bf16 %v1433_v53, %v1432_v51  ;;  %v1623_v51 = vld [vmem:[#allocation6 + $0x3c0] sm:$0xff]  ;;  %v1624_v53 = vld [vmem:[#allocation6 + $0x3c8] sm:$0xff] }
 0x1a0   :  { %v1715_v61 = vld [vmem:[#allocation6 + $0x408] sm:$0xff] }
 0x1a1   :  { %2435 = vmatmul.mubr.f32.gmra.mrb[2].mxu1 %v1067_v57  ;;  %v2880_v57 = vpack.c.bf16 %v1448_v56, %v1447_v55  ;;  %2917 = vmatprep.subr.bf16.mxu0 %v2916_v54  ;;  %v1625_v55 = vld [vmem:[#allocation6 + $0x3d0] sm:$0xff]  ;;  %v1626_v56 = vld [vmem:[#allocation6 + $0x3d8] sm:$0xff] }
 0x1a2   :  { %2811 = vmatpush3.bf16.msra.mxu1 %v2808_v58  ;;  %2469 = vmatprep.mubr.f32.mxu1 %v3408_v22  ;;  %v2832_v22 = vpack.c.bf16 %v1178_v18, %v1177_v17  ;;  %v1450_v58 = vld [vmem:[#allocation6 + $0x348] sm:$0xff]  ;;  %v1456_v17 = vld [vmem:[#allocation6 + $0x378] sm:$0xff] }
 0x1a3   :  { %2813 = vmatprep.subr.bf16.mxu1 %v2812_v63  ;;  %2919 = vmatpush3.bf16.msra.mxu0 %v2916_v54  ;;  %v2896_v18 = vpack.c.bf16 %v1456_v17, %v1455_v13  ;;  %v2948_v54 = vpack.c.bf16 %v1624_v53, %v1623_v51  ;;  %v1723_v17 = vld [vmem:[#allocation6 + $0x448] sm:$0xff]  ;;  %v1828_v51 = vld [vmem:[#allocation6 + $0x4f8] sm:$0xff] }
 0x1a6   :  { %2815 = vmatpush3.bf16.msra.mxu1 %v2812_v63  ;;  %v1451_v63 = vld [vmem:[#allocation6 + $0x350] sm:$0xff] }
 0x1a7   :  { %2817 = vmatprep.subr.bf16.mxu1 %v2816_v1  ;;  %v2888_v31 = vpack.c.bf16 %v1452_v0, %v1451_v63  ;;  %v1716_v63 = vld [vmem:[#allocation6 + $0x410] sm:$0xff]  ;;  %v1717_v0 = vld [vmem:[#allocation6 + $0x418] sm:$0xff] }
 0x1aa   :  { %2819 = vmatpush3.bf16.msra.mxu1 %v2816_v1  ;;  %v1438_v1 = vld [vmem:[#allocation6 + $0x2f0] sm:$0xff] }
 0x1ab   :  { %2821 = vmatprep.subr.bf16.mxu1 %v2820_v7 }
 0x1ae   :  { %2823 = vmatpush3.bf16.msra.mxu1 %v2820_v7  ;;  %v2928_v7 = vpack.c.bf16 %v1439_v2, %v1438_v1  ;;  %v2968_v2 = vpack.c.bf16 %v1717_v0, %v1716_v63 }
 0x1af   :  { %2825 = vmatprep.subr.bf16.mxu1 %v2824_v10 }
 0x1b2   :  { %2827 = vmatpush3.bf16.msra.mxu1 %v2824_v10  ;;  %v1615_v10 = vld [vmem:[#allocation6 + $0x380] sm:$0xff] }
 0x1b3   :  { %2829 = vmatprep.subr.bf16.mxu1 %v2828_v15 }
 0x1b6   :  { %2831 = vmatpush3.bf16.msra.mxu1 %v2828_v15  ;;  %v2932_v15 = vpack.c.bf16 %v1616_v11, %v1615_v10  ;;  %v1720_v10 = vld [vmem:[#allocation6 + $0x430] sm:$0xff]  ;;  %v1721_v11 = vld [vmem:[#allocation6 + $0x438] sm:$0xff] }
 0x1b7   :  { %2833 = vmatprep.subr.bf16.mxu1 %v2832_v22  ;;  %v2976_v13 = vpack.c.bf16 %v1721_v11, %v1720_v10 }
 0x1ba   :  { %2835 = vmatpush3.bf16.msra.mxu1 %v2832_v22  ;;  %v1985_v22 = vld [vmem:[%s3500_s3 + $0x1] ss:$0 sm:$0xff] }
 0x1bb   :  { %2837 = vmatprep.subr.bf16.mxu1 %v2836_v23 }
 0x1bd   :  { %2470 = vmatmul.mubr.f32.vlgmr.msra.gmra.mrb[0].mxu1 %v3420_v42  ;;  %v2852_v42 = vpack.c.bf16 %v1289_v16, %v1288_v14 }
 0x1be   :  { %2472 = vmatprep.mubr.f32.mxu1 %v3433_v52  ;;  %2839 = vmatpush3.bf16.msra.mxu1 %v2836_v23  ;;  %v1291_v52 = vld [vmem:[#allocation6 + $0x258] sm:$0xff] }
 0x1bf   :  { %2841 = vmatprep.subr.bf16.mxu1 %v2840_v5  ;;  %v2856_v34 = vpack.c.bf16 %v1291_v52, %v1290_v33  ;;  %v1617_v33 = vld [vmem:[#allocation6 + $0x390] sm:$0xff]  ;;  %v1618_v52 = vld [vmem:[#allocation6 + $0x398] sm:$0xff] }
 0x1c1   :  { %2473 = vmatmul.mubr.f32.gmra.mrb[2].mxu1 %v1184_v45  ;;  %v2860_v45 = vpack.c.bf16 %v1293_v36, %v1292_v35 }
 0x1c2   :  { %2843 = vmatpush3.bf16.msra.mxu1 %v2840_v5  ;;  %2507 = vmatprep.mubr.f32.mxu1 %v3411_v32  ;;  %v2864_v32 = vpack.c.bf16 %v1295_v37, %v1294_v25  ;;  %v1619_v25 = vld [vmem:[#allocation6 + $0x3a0] sm:$0xff]  ;;  %v1620_v37 = vld [vmem:[#allocation6 + $0x3a8] sm:$0xff] }
 0x1c3   :  { %2845 = vmatprep.subr.bf16.mxu1 %v2844_v29 }
 0x1c6   :  { %2847 = vmatpush3.bf16.msra.mxu1 %v2844_v29 }
 0x1c7   :  { %2849 = vmatprep.subr.bf16.mxu1 %v2848_v30 }
 0x1ca   :  { %2851 = vmatpush3.bf16.msra.mxu1 %v2848_v30 }
 0x1cb   :  { %2853 = vmatprep.subr.bf16.mxu1 %v2852_v42 }
 0x1ce   :  { %2855 = vmatpush3.bf16.msra.mxu1 %v2852_v42 }
 0x1cf   :  { %2857 = vmatprep.subr.bf16.mxu1 %v2856_v34 }
 0x1d2   :  { %2859 = vmatpush3.bf16.msra.mxu1 %v2856_v34 }
 0x1d3   :  { %2861 = vmatprep.subr.bf16.mxu1 %v2860_v45 }
 0x1d6   :  { %2863 = vmatpush3.bf16.msra.mxu1 %v2860_v45  ;;  %v2936_v45 = vpack.c.bf16 %v1618_v52, %v1617_v33 }
 0x1d7   :  { %2865 = vmatprep.subr.bf16.mxu1 %v2864_v32 }
 0x1da   :  { %2867 = vmatpush3.bf16.msra.mxu1 %v2864_v32 }
 0x1db   :  { %2869 = vmatprep.subr.bf16.mxu1 %v2868_v39 }
 0x1dd   :  { %2508 = vmatmul.mubr.f32.vlgmr.msra.gmra.mrb[0].mxu1 %v3423_v43  ;;  %v1434_v43 = vld [vmem:[#allocation6 + $0x2d0] sm:$0xff] }
 0x1de   :  { %2510 = vmatprep.mubr.f32.mxu1 %v3438_v50  ;;  %2871 = vmatpush3.bf16.msra.mxu1 %v2868_v39  ;;  %v1435_v50 = vld [vmem:[#allocation6 + $0x2d8] sm:$0xff] }
 0x1df   :  { %2873 = vmatprep.subr.bf16.mxu1 %v2872_v44  ;;  %v2920_v40 = vpack.c.bf16 %v1435_v50, %v1434_v43  ;;  %v1627_v43 = vld [vmem:[#allocation6 + $0x3e0] sm:$0xff]  ;;  %v1628_v50 = vld [vmem:[#allocation6 + $0x3e8] sm:$0xff] }
 0x1e1   :  { %2511 = vmatmul.mubr.f32.gmra.mrb[2].mxu1 %v1301_v46  ;;  %v1449_v46 = vld [vmem:[#allocation6 + $0x340] sm:$0xff]  ;;  %2921 = vmatprep.subr.bf16.mxu0 %v2920_v40 }
 0x1e2   :  { %2875 = vmatpush3.bf16.msra.mxu1 %v2872_v44  ;;  %v2884_v59 = vpack.c.bf16 %v1450_v58, %v1449_v46  ;;  %2923 = vmatpush3.bf16.msra.mxu0 %v2920_v40  ;;  %v2940_v44 = vpack.c.bf16 %v1620_v37, %v1619_v25  ;;  %v2956_v40 = vpack.c.bf16 %v1628_v50, %v1627_v43  ;;  %v1629_v46 = vld [vmem:[#allocation6 + $0x3f0] sm:$0xff]  ;;  %v1630_v58 = vld [vmem:[#allocation6 + $0x3f8] sm:$0xff] }
 0x1e3   :  { %2877 = vmatprep.subr.bf16.mxu1 %v2876_v49  ;;  %2925 = vmatprep.subr.bf16.mxu0 %v2924_v62  ;;  %v1819_v37 = vld [vmem:[#allocation6 + $0x4b0] sm:$0xff] }
 0x1e6   :  { %2879 = vmatpush3.bf16.msra.mxu1 %v2876_v49  ;;  %2927 = vmatpush3.bf16.msra.mxu0 %v2924_v62  ;;  %v2944_v49 = vpack.c.bf16 %v1622_v48, %v1621_v47  ;;  %v2964_v62 = vpack.c.bf16 %v1715_v61, %v1714_v60  ;;  %v1826_v47 = vld [vmem:[#allocation6 + $0x4e8] sm:$0xff] }
 0x1e7   :  { %2881 = vmatprep.subr.bf16.mxu1 %v2880_v57  ;;  %2929 = vmatprep.subr.bf16.mxu0 %v2928_v7 }
 0x1ea   :  { %2883 = vmatpush3.bf16.msra.mxu1 %v2880_v57  ;;  %2931 = vmatpush3.bf16.msra.mxu0 %v2928_v7  ;;  %v2952_v57 = vpack.c.bf16 %v1626_v56, %v1625_v55  ;;  %v1719_v7 = vld [vmem:[#allocation6 + $0x428] sm:$0xff] }
 0x1eb   :  { %2885 = vmatprep.subr.bf16.mxu1 %v2884_v59  ;;  %2933 = vmatprep.subr.bf16.mxu0 %v2932_v15  ;;  %v1987_v56 = vld [vmem:[%s3500_s3 + $0x2] ss:$0 sm:$0xff] }
 0x1ee   :  { %2887 = vmatpush3.bf16.msra.mxu1 %v2884_v59  ;;  %v2960_v59 = vpack.c.bf16 %v1630_v58, %v1629_v46 }
 0x1ef   :  { %2889 = vmatprep.subr.bf16.mxu1 %v2888_v31 }
 0x1f2   :  { %2891 = vmatpush3.bf16.msra.mxu1 %v2888_v31 }
 0x1f3   :  { %2893 = vmatprep.subr.bf16.mxu1 %v2892_v9 }
 0x1f6   :  { %2895 = vmatpush3.bf16.msra.mxu1 %v2892_v9  ;;  %v2972_v9 = vpack.c.bf16 %v1719_v7, %v1718_v3 }
 0x1f7   :  { %2897 = vmatprep.subr.bf16.mxu1 %v2896_v18 }
 0x1fa   :  { %2899 = vmatpush3.bf16.msra.mxu1 %v2896_v18 }
 0x2b0   :  { %v2509_v20 = vpop.f32.mrb[0].mxu1 }
 0x2b1   :  { %v1403_v21 = vadd.f32 %v2509_v20, %v1985_v22  ;;  %v1373_v23 = vpop.f32.mrb[1].mxu1  ;;  %v1725_v20 = vld [vmem:[#allocation6 + $0x458] sm:$0xff] }
 0x2b2   :  { %v1402_v26 = vadd.f32 %v1985_v22, %v1373_v23  ;;  %v1726_v23 = vld [vmem:[#allocation6 + $0x460] sm:$0xff] }
 0x2b3   :  { %v1407_v4 = vmax.f32 %v1403_v21, 0.0 }
 0x2b4   :  { %v1406_v5 = vmax.f32 %v1402_v26, 0.0  ;;  %v2512_v27 = vpop.f32.mrb[2].mxu1  ;;  %v1727_v26 = vld [vmem:[#allocation6 + $0x468] sm:$0xff] }
 0x2b5   :  { %1411 = vst [vmem:[#allocation2 + $0x8] sm:$0xff] %v1407_v4  ;;  %v1405_v28 = vadd.f32 %v2512_v27, %v1985_v22  ;;  %v1383_v29 = vpop.f32.mrb[3].mxu1  ;;  %v2988_v4 = vpack.c.bf16 %v1727_v26, %v1726_v23  ;;  %v1729_v27 = vld [vmem:[#allocation6 + $0x478] sm:$0xff] }
 0x2b6   :  { %1410 = vst [vmem:[#allocation2] sm:$0xff] %v1406_v5  ;;  %v1404_v6 = vadd.f32 %v1985_v22, %v1383_v29  ;;  %v1724_v22 = vld [vmem:[#allocation6 + $0x450] sm:$0xff]  ;;  %v1813_v29 = vld [vmem:[#allocation6 + $0x480] sm:$0xff] }
 0x2b7   :  { %v1409_v12 = vmax.f32 %v1405_v28, 0.0  ;;  %v2984_v21 = vpack.c.bf16 %v1725_v20, %v1724_v22  ;;  %v1728_v5 = vld [vmem:[#allocation6 + $0x470] sm:$0xff] }
 0x2b8   :  { %v1408_v30 = vmax.f32 %v1404_v6, 0.0  ;;  %v2992_v28 = vpack.c.bf16 %v1729_v27, %v1728_v5  ;;  %v1814_v6 = vld [vmem:[#allocation6 + $0x488] sm:$0xff] }
 0x2b9   :  { %1413 = vst [vmem:[#allocation2 + $0x18] sm:$0x3] %v1409_v12  ;;  %v2996_v12 = vpack.c.bf16 %v1814_v6, %v1813_v29 }
 0x2ba   :  { %1412 = vst [vmem:[#allocation2 + $0x10] sm:$0xff] %v1408_v30  ;;  %v1815_v30 = vld [vmem:[#allocation6 + $0x490] sm:$0xff] }
 0x2bd   :  { %v1414_v14 = vld [vmem:[#allocation2] ss:$2 sm:$0xff]  ;;  %v1417_v16 = vld [vmem:[#allocation2 + $0x1] ss:$2 sm:$0xff] }
 0x2be   :  { %v3464_v42 = vmax.f32 %v1414_v14, %v1417_v16  ;;  %v1816_v14 = vld [vmem:[#allocation6 + $0x498] sm:$0xff] }
 0x2bf   :  { %v3000_v52 = vpack.c.bf16 %v1816_v14, %v1815_v30 }
 0x2c0   :  { %2580 = vmatprep.mubr.f32.mxu0 %v3464_v42  ;;  %v1459_v32 = vrot.slane %v3464_v42, 1  ;;  %v1631_v19 = vrot.slane %v3464_v42, 2  ;;  %v1730_v1 = vrot.slane %v3464_v42, 3  ;;  %v1829_v33 = vrot.slane %v3464_v42, 4 }
 0x2c1   :  { %v1416_v34 = vld [vmem:[#allocation2 + $0x10] ss:$2 sm:$0x1f]  ;;  %v1418_v35 = vld [vmem:[#allocation2 + $0x11] ss:$2 sm:$0x1f] }
 0x2c2   :  { %v3467_v36 = vmax.f32 %v1416_v34, %v1418_v35  ;;  %v1817_v34 = vld [vmem:[#allocation6 + $0x4a0] sm:$0xff]  ;;  %v1818_v35 = vld [vmem:[#allocation6 + $0x4a8] sm:$0xff] }
 0x2c3   :  { %v3004_v25 = vpack.c.bf16 %v1818_v35, %v1817_v34 }
 0x2c4   :  { %2581 = vmatmul.mubr.f32.vlgmr.msra.gmra.mrb[8].mxu0 %v3467_v36  ;;  %v1460_v38 = vrot.slane %v3467_v36, 1  ;;  %v1632_v39 = vrot.slane %v3467_v36, 2  ;;  %v1731_v31 = vrot.slane %v3467_v36, 3  ;;  %v1830_v16 = vrot.slane %v3467_v36, 4  ;;  %v1821_v36 = vld [vmem:[#allocation6 + $0x4c0] sm:$0xff] }
 0x2c5   :  { %2935 = vmatpush3.bf16.msra.mxu0 %v2932_v15  ;;  %v1722_v15 = vld [vmem:[#allocation6 + $0x440] sm:$0xff] }
 0x2c6   :  { %v1461_v41 = vsel %vm70_vm0, %v1459_v32, %v1460_v38  ;;  %2937 = vmatprep.subr.bf16.mxu0 %v2936_v45  ;;  %v1633_v24 = vsel %vm333_vm3, %v1631_v19, %v1632_v39  ;;  %v1732_v8 = vsel %vm482_vm4, %v1730_v1, %v1731_v31  ;;  %v2980_v18 = vpack.c.bf16 %v1723_v17, %v1722_v15  ;;  %v1820_v32 = vld [vmem:[#allocation6 + $0x4b8] sm:$0xff]  ;;  %v1822_v19 = vld [vmem:[#allocation6 + $0x4c8] sm:$0xff] }
 0x2c7   :  { %2545 = vmatprep.mubr.f32.mxu1 %v1461_v41  ;;  %2615 = vmatprep.mubr.f32.mxu0 %v1633_v24  ;;  %v3012_v42 = vpack.c.bf16 %v1822_v19, %v1821_v36  ;;  %v1824_v41 = vld [vmem:[#allocation6 + $0x4d8] sm:$0xff] }
 0x2c8   :  { %2546 = vmatmul.mubr.f32.vlgmr.msra.gmra.mrb[4].mxu1 %v1460_v38  ;;  %v3008_v38 = vpack.c.bf16 %v1820_v32, %v1819_v37 }
 0x2c9   :  { %2939 = vmatpush3.bf16.msra.mxu0 %v2936_v45  ;;  %v1831_v45 = vsel %vm631_vm2, %v1829_v33, %v1830_v16 }
 0x2ca   :  { %2941 = vmatprep.subr.bf16.mxu0 %v2940_v44 }
 0x2cd   :  { %2943 = vmatpush3.bf16.msra.mxu0 %v2940_v44  ;;  %v1825_v44 = vld [vmem:[#allocation6 + $0x4e0] sm:$0xff] }
 0x2ce   :  { %2945 = vmatprep.subr.bf16.mxu0 %v2944_v49  ;;  %v3020_v48 = vpack.c.bf16 %v1826_v47, %v1825_v44 }
 0x2d1   :  { %2947 = vmatpush3.bf16.msra.mxu0 %v2944_v49  ;;  %v1827_v49 = vld [vmem:[#allocation6 + $0x4f0] sm:$0xff] }
 0x2d2   :  { %2949 = vmatprep.subr.bf16.mxu0 %v2948_v54  ;;  %v3024_v53 = vpack.c.bf16 %v1828_v51, %v1827_v49 }
 0x2d5   :  { %2951 = vmatpush3.bf16.msra.mxu0 %v2948_v54 }
 0x2d6   :  { %2953 = vmatprep.subr.bf16.mxu0 %v2952_v57 }
 0x2d9   :  { %2955 = vmatpush3.bf16.msra.mxu0 %v2952_v57 }
 0x2da   :  { %2957 = vmatprep.subr.bf16.mxu0 %v2956_v40 }
 0x2dd   :  { %2959 = vmatpush3.bf16.msra.mxu0 %v2956_v40 }
 0x2de   :  { %2961 = vmatprep.subr.bf16.mxu0 %v2960_v59 }
 0x2e1   :  { %2963 = vmatpush3.bf16.msra.mxu0 %v2960_v59 }
 0x2e2   :  { %2965 = vmatprep.subr.bf16.mxu0 %v2964_v62 }
 0x2e4   :  { %2616 = vmatmul.mubr.f32.vlgmr.msra.gmra.mrb[8].mxu0 %v1632_v39  ;;  %v1823_v39 = vld [vmem:[#allocation6 + $0x4d0] sm:$0xff] }
 0x2e5   :  { %2967 = vmatpush3.bf16.msra.mxu0 %v2964_v62  ;;  %2650 = vmatprep.mubr.f32.mxu0 %v1732_v8  ;;  %v3016_v24 = vpack.c.bf16 %v1824_v41, %v1823_v39 }
 0x2e6   :  { %2969 = vmatprep.subr.bf16.mxu0 %v2968_v2 }
 0x2e9   :  { %2971 = vmatpush3.bf16.msra.mxu0 %v2968_v2 }
 0x2ea   :  { %2973 = vmatprep.subr.bf16.mxu0 %v2972_v9 }
 0x2ed   :  { %2975 = vmatpush3.bf16.msra.mxu0 %v2972_v9 }
 0x2ee   :  { %2977 = vmatprep.subr.bf16.mxu0 %v2976_v13 }
 0x2f1   :  { %2979 = vmatpush3.bf16.msra.mxu0 %v2976_v13 }
 0x2f2   :  { %2981 = vmatprep.subr.bf16.mxu0 %v2980_v18 }
 0x2f5   :  { %2983 = vmatpush3.bf16.msra.mxu0 %v2980_v18 }
 0x2f6   :  { %2985 = vmatprep.subr.bf16.mxu0 %v2984_v21 }
 0x2f9   :  { %2987 = vmatpush3.bf16.msra.mxu0 %v2984_v21 }
 0x2fa   :  { %2989 = vmatprep.subr.bf16.mxu0 %v2988_v4 }
 0x2fd   :  { %2991 = vmatpush3.bf16.msra.mxu0 %v2988_v4 }
 0x2fe   :  { %2993 = vmatprep.subr.bf16.mxu0 %v2992_v28 }
 0x301   :  { %2995 = vmatpush3.bf16.msra.mxu0 %v2992_v28 }
 0x302   :  { %2997 = vmatprep.subr.bf16.mxu0 %v2996_v12 }
 0x304   :  { %2651 = vmatmul.mubr.f32.vlgmr.msra.gmra.mrb[8].mxu0 %v1731_v31 }
 0x305   :  { %2999 = vmatpush3.bf16.msra.mxu0 %v2996_v12  ;;  %2685 = vmatprep.mubr.f32.mxu0 %v1831_v45 }
 0x306   :  { %3001 = vmatprep.subr.bf16.mxu0 %v3000_v52 }
 0x309   :  { %3003 = vmatpush3.bf16.msra.mxu0 %v3000_v52 }
 0x30a   :  { %3005 = vmatprep.subr.bf16.mxu0 %v3004_v25 }
 0x30d   :  { %3007 = vmatpush3.bf16.msra.mxu0 %v3004_v25 }
 0x30e   :  { %3009 = vmatprep.subr.bf16.mxu0 %v3008_v38 }
 0x311   :  { %3011 = vmatpush3.bf16.msra.mxu0 %v3008_v38 }
 0x312   :  { %3013 = vmatprep.subr.bf16.mxu0 %v3012_v42 }
 0x315   :  { %3015 = vmatpush3.bf16.msra.mxu0 %v3012_v42 }
 0x316   :  { %3017 = vmatprep.subr.bf16.mxu0 %v3016_v24 }
 0x319   :  { %3019 = vmatpush3.bf16.msra.mxu0 %v3016_v24 }
 0x31a   :  { %3021 = vmatprep.subr.bf16.mxu0 %v3020_v48 }
 0x31d   :  { %3023 = vmatpush3.bf16.msra.mxu0 %v3020_v48 }
 0x31e   :  { %3025 = vmatprep.subr.bf16.mxu0 %v3024_v53 }
 0x321   :  { %3027 = vmatpush3.bf16.msra.mxu0 %v3024_v53 }
 0x324   :  { %2686 = vmatmul.mubr.f32.vlgmr.msra.gmra.mrb[8].mxu0 %v1830_v16 }
 0x39b   :  { %v2547_v54 = vpop.f32.mrb[4].mxu1 }
 0x39c   :  { %v1530_v55 = vpop.f32.mrb[5].mxu1 }
 0x3f7   :  { %v2687_v57 = vpop.f32.mrb[8].mxu0 }
 0x3f8   :  { %v3028_v43 = vadd.f32 %v2687_v57, %v2547_v54  ;;  %v1900_v50 = vpop.f32.mrb[9].mxu0 }
 0x3f9   :  { %v3029_v40 = vadd.f32 %v1900_v50, %v1530_v55 }
 0x3fa   :  { %v1918_v46 = vadd.f32 %v3028_v43, %v1987_v56 }
 0x3fb   :  { %v1917_v58 = vadd.f32 %v3029_v40, %v1987_v56 }
 0x3fc   :  { %v1920_v59 = vmax.f32 %v1918_v46, 0.0 }
 0x3fd   :  { %v1919_v60 = vmax.f32 %v1917_v58, 0.0 }
 0x3fe   :  { %1922 = vst [vmem:[#allocation2 + $0x8] sm:$0x1] %v1920_v59 }
 0x3ff   :  { %1921 = vst [vmem:[#allocation2] sm:$0xff] %v1919_v60 }
 0x406   :  { %v1923_v61 = vld [vmem:[#allocation2] ss:$2 sm:$0xf]  ;;  %v1924_v62 = vld [vmem:[#allocation2 + $0x1] ss:$2 sm:$0xf] }
 0x407   :  { %v1925_v63 = vmax.f32 %v1923_v61, %v1924_v62 }
 0x409   :  { %1926 = vst [vmem:[#allocation8] sm:$0xf] %v1925_v63 }
 0x40a   :  { %3144 = shalt.err (!%p3141_p6)
}
 0x40b   :  { %s3145_s12 = scalar_lea.hbm %s3501_s4, 64 }
 0x40c   :  { %p3146_p7 = scmp.ne.s32.totalorder %s3501_s4, %s3145_s12  ;;  %p3149_p8 = scmp.lt.u32.totalorder %s3145_s12, %s3501_s4 }
 0x40e   :  { %p3151_p9 = pnand %p3149_p8, %p3146_p7 }
 0x410   :  { %3154 = shalt.err (!%p3151_p9)
}
 0x411   :  { %1936 = dma.vmem_to_hbm [thread:$0]  %s1934_s9, 64, %s3501_s4, [#allocation5]  }
 0x412   :  { %3159 = dma.done.wait [#allocation5], 64  }
 0x413   :  { %3160 = vsyncadd [#allocation5], 4294967232 }
 0x414   :  { %1940 = vsyncpa [#allocation4], 1 }
 0x415   :  { %1941 = vsyncpa [#allocation7], 1 }
 0x416   :  { %1942 = vsyncpa [#allocation5], 1 }

</bundles_post_ra>
